<compile_context>
chip_gen: v5e
topology: v5e:2x2
jax: 0.10.0
libtpu: 0.0.40
codegen_flags: <defaults>
</compile_context>

<pallas_src>
import math

import jax
import jax.numpy as jnp
from jax.experimental import pallas as pl
from jax.experimental.pallas import tpu as pltpu

_INV_SQRT2 = 0.7071067811865476


def _round_up(x, m):
    return ((x + m - 1) // m) * m


def _erf_approx(x):
    # Abramowitz & Stegun 7.1.26 (|err| < 1.5e-7): only exp/mul/add, lowers
    # cleanly on the TPU VPU/EUP.
    a1, a2, a3, a4, a5 = (0.254829592, -0.284496736, 1.421413741,
                          -1.453152027, 1.061405429)
    p = 0.3275911
    ax = jnp.abs(x)
    t = 1.0 / (1.0 + p * ax)
    poly = ((((a5 * t + a4) * t + a3) * t + a2) * t + a1) * t
    y = 1.0 - poly * jnp.exp(-ax * ax)
    return jnp.where(x >= 0.0, y, -y)


def _gelu_exact(x):
    return 0.5 * x * (1.0 + _erf_approx(x * _INV_SQRT2))


def _gelu_tanh(x):
    c = 0.7978845608028654  # sqrt(2/pi)
    return 0.5 * x * (1.0 + jnp.tanh(c * (x + 0.044715 * x * x * x)))


# ----------------------------------------------------------------------------
# Generation-dependent tiling / VMEM budget.
# ----------------------------------------------------------------------------
def _hw_config():
    vmem_bytes = 64 * 1024 * 1024
    try:
        vmem_bytes = int(pltpu.get_tpu_info().vmem_capacity_bytes)
    except Exception:
        pass  # fall back to the conservative (v7x-sized) config
    if vmem_bytes >= 100 * 1024 * 1024:            # v5e / v6e: 128 MiB VMEM
        return dict(vmem_limit=96 * 1024 * 1024, tt=512, tm=512,
                    weight_budget=16 * 1024 * 1024)
    return dict(vmem_limit=48 * 1024 * 1024, tt=256, tm=256,   # v7x: 64 MiB
                weight_budget=8 * 1024 * 1024)


def _token_tiling(T, tt_target):
    if T >= tt_target:
        return tt_target, _round_up(T, tt_target)
    tt = _round_up(T, 16)          # bf16 sublane tiling (16, 128)
    return tt, tt


def _row_tile(S, E, tm_target):
    # Keep per-expert padding (< tm rows each) small relative to the S routed
    # rows while still filling the MXU for large S.
    avg = max(1, S // max(E, 1))
    return min(tm_target, max(16, _round_up(avg, 16)))


def _hidden_chunk(D, H, weight_budget):
    # bf16 W1(D,Hc)+W2(Hc,D), double-buffered, must fit the per-expert weight
    # budget.  If the full H fits, weights are streamed exactly once per
    # expert (best for v5e HBM); otherwise chunk H for v7x VMEM feasibility.
    if 2 * (2 * D * H * 2) <= weight_budget:
        return H
    for c in (512, 256, 128):
        if H % c == 0:
            return c
    return H


# ----------------------------------------------------------------------------
# Kernel 1: fused gate -> raw logits, lane-padded to Ep (>=128) columns.
#   logits = gelu_exact(x @ Wg1 + bg1) @ Wg2p + bg2p
# softmax / top-k / aux loss run on the tiny (T, E) slab in the XLA wrapper.
# ----------------------------------------------------------------------------
def _gate_kernel(x_ref, wg1_ref, bg1_ref, wg2_ref, bg2_ref, o_ref):
    h = jnp.dot(x_ref[...], wg1_ref[...],
                preferred_element_type=jnp.float32) + bg1_ref[...]
    h = _gelu_exact(h)
    logits = jnp.dot(h.astype(jnp.bfloat16), wg2_ref[...],
                     preferred_element_type=jnp.float32) + bg2_ref[...]
    o_ref[...] = logits.astype(o_ref.dtype)


def gate_logits_pallas(x_bf16, wg1, bg1, wg2p, bg2p, *, tt, vmem_limit):
    Tp, D = x_bf16.shape
    H = wg1.shape[1]
    Ep = wg2p.shape[1]
    return pl.pallas_call(
        _gate_kernel,
        out_shape=jax.ShapeDtypeStruct((Tp, Ep), jnp.float32),
        grid_spec=pltpu.PrefetchScalarGridSpec(
            num_scalar_prefetch=0,
            grid=(Tp // tt,),
            in_specs=[
                pl.BlockSpec((tt, D), lambda i: (i, 0)),   # x (bf16)
                pl.BlockSpec((D, H), lambda i: (0, 0)),    # Wg1 (bf16)
                pl.BlockSpec((1, H), lambda i: (0, 0)),    # bg1 (f32)
                pl.BlockSpec((H, Ep), lambda i: (0, 0)),   # Wg2 padded (bf16)
                pl.BlockSpec((1, Ep), lambda i: (0, 0)),   # bg2 padded (f32)
            ],
            out_specs=pl.BlockSpec((tt, Ep), lambda i: (i, 0)),
        ),
        compiler_params=pltpu.CompilerParams(
            dimension_semantics=("parallel",),
            vmem_limit_bytes=vmem_limit),
    )(x_bf16, wg1, bg1, wg2p, bg2p)


# ----------------------------------------------------------------------------
# Kernel 2: grouped (token-gather) expert MLP.
# Rows are pre-compacted per expert in the wrapper; grid = (row tiles, H
# chunks).  tile_expert (SMEM scalar prefetch) drives the W1/W2 index_maps, so
# each tile only multiplies the weights of the expert that owns its rows, and
# consecutive tiles of the same expert reuse the already-resident weights.
# o_ref (block index constant across the H axis) is the f32 accumulator.
# ----------------------------------------------------------------------------
def _grouped_expert_kernel(tile_expert_ref, x_ref, w1_ref, b1_ref, w2_ref,
                           b2_ref, o_ref):
    hc = pl.program_id(1)

    @pl.when(hc == 0)
    def _():
        o_ref[...] = jnp.zeros_like(o_ref) + b2_ref[0]

    h = jnp.dot(x_ref[...], w1_ref[0],
                preferred_element_type=jnp.float32) + b1_ref[0]
    h = _gelu_tanh(h)
    o_ref[...] += jnp.dot(h.astype(jnp.bfloat16), w2_ref[0],
                          preferred_element_type=jnp.float32)


def grouped_expert_mlp_pallas(tile_expert, x_rows, w1, b1, w2, b2, *,
                              tm, hc, vmem_limit):
    R, D = x_rows.shape
    E, _, H = w1.shape
    n_hc = H // hc
    return pl.pallas_call(
        _grouped_expert_kernel,
        out_shape=jax.ShapeDtypeStruct((R, D), jnp.float32),
        grid_spec=pltpu.PrefetchScalarGridSpec(
            num_scalar_prefetch=1,                       # tile -> expert id
            grid=(R // tm, n_hc),
            in_specs=[
                pl.BlockSpec((tm, D), lambda i, c, te: (i, 0)),         # rows
                pl.BlockSpec((1, D, hc), lambda i, c, te: (te[i], 0, c)),  # W1
                pl.BlockSpec((1, 1, hc), lambda i, c, te: (te[i], 0, c)),  # b1
                pl.BlockSpec((1, hc, D), lambda i, c, te: (te[i], c, 0)),  # W2
                pl.BlockSpec((1, 1, D), lambda i, c, te: (te[i], 0, 0)),   # b2
            ],
            out_specs=pl.BlockSpec((tm, D), lambda i, c, te: (i, 0)),
        ),
        compiler_params=pltpu.CompilerParams(
            dimension_semantics=("parallel", "arbitrary"),
            vmem_limit_bytes=vmem_limit),
    )(tile_expert, x_rows, w1, b1, w2, b2)


# ----------------------------------------------------------------------------
# Kernel 3: shared expert + task-alpha blend (fused, no VMEM scratch).
#   y = alpha * routed + (1 - alpha) * MLP_shared(x)
# ----------------------------------------------------------------------------
def _shared_blend_kernel(x_ref, routed_ref, alpha_ref,
                         ws1_ref, bs1_ref, ws2_ref, bs2_ref, o_ref):
    h = jnp.dot(x_ref[...], ws1_ref[...],
                preferred_element_type=jnp.float32) + bs1_ref[...]
    h = _gelu_tanh(h)
    shared = jnp.dot(h.astype(jnp.bfloat16), ws2_ref[...],
                     preferred_element_type=jnp.float32) + bs2_ref[...]
    a = alpha_ref[...]
    o_ref[...] = (a * routed_ref[...] + (1.0 - a) * shared).astype(o_ref.dtype)


def shared_blend_pallas(x_bf16, routed, alpha, ws1, bs1, ws2, bs2, *,
                        tt, vmem_limit):
    Tp, D = x_bf16.shape
    H = ws1.shape[1]
    return pl.pallas_call(
        _shared_blend_kernel,
        out_shape=jax.ShapeDtypeStruct((Tp, D), jnp.float32),
        grid_spec=pltpu.PrefetchScalarGridSpec(
            num_scalar_prefetch=0,
            grid=(Tp // tt,),
            in_specs=[
                pl.BlockSpec((tt, D), lambda i: (i, 0)),   # x (bf16)
                pl.BlockSpec((tt, D), lambda i: (i, 0)),   # routed sum (f32)
                pl.BlockSpec((tt, 1), lambda i: (i, 0)),   # alpha (f32)
                pl.BlockSpec((D, H), lambda i: (0, 0)),    # shared W1
                pl.BlockSpec((1, H), lambda i: (0, 0)),    # shared b1
                pl.BlockSpec((H, D), lambda i: (0, 0)),    # shared W2
                pl.BlockSpec((1, D), lambda i: (0, 0)),    # shared b2
            ],
            out_specs=pl.BlockSpec((tt, D), lambda i: (i, 0)),
        ),
        compiler_params=pltpu.CompilerParams(
            dimension_semantics=("parallel",),
            vmem_limit_bytes=vmem_limit),
    )(x_bf16, routed, alpha, ws1, bs1, ws2, bs2)


# ----------------------------------------------------------------------------
# One DeepSeekMoE layer: routing / compaction glue in XLA, matmuls in Pallas.
# ----------------------------------------------------------------------------
def deepseek_moe_layer(x, task_ids, p, k, cfg):
    B, L, D = x.shape
    T = B * L
    E, _, H = p["w1"].shape
    task_num = p["task_alphas"].shape[0]

    TT, Tp = _token_tiling(T, cfg["tt"])
    xf_bf = x.reshape(T, D).astype(jnp.bfloat16)
    xp_bf = jnp.pad(xf_bf, ((0, Tp - T), (0, 0)))

    # --- fused gate kernel -> logits; softmax / top-k on the (T, E) slab.
    #     (bf16 gate matmuls: near-tied logits may route differently than an
    #      f32 reference; acceptable for a perf kernel.)
    logits_p = gate_logits_pallas(xp_bf, p["wg1"], p["bg1"], p["wg2p"],
                                  p["bg2p"], tt=TT, vmem_limit=cfg["vmem_limit"])
    gate_probs = jax.nn.softmax(logits_p[:T, :E], axis=-1)
    # topk weights are computed but (as in the PyTorch forward) never used to
    # scale the expert outputs.
    _topk_w, topk_idx = jax.lax.top_k(gate_probs, k)

    # --- auxiliary load-balance loss (mean over tasks present in the batch)
    task_tok = jnp.repeat(task_ids, L)
    onehot_t = jax.nn.one_hot(task_tok, task_num, dtype=jnp.float32)
    counts_task = onehot_t.sum(axis=0)
    mean_p = (onehot_t.T @ gate_probs) / jnp.maximum(counts_task, 1.0)[:, None]
    aux_t = (mean_p * mean_p).sum(axis=-1) * E
    present = counts_task > 0
    loss = jnp.sum(jnp.where(present, aux_t, 0.0)) / jnp.maximum(
        jnp.sum(present.astype(jnp.float32)), 1.0)

    # --- compact the T*k routed (token, slot) rows into per-expert slabs,
    #     each padded to a multiple of the row tile tm (static bound R).
    S = T * k
    tm = _row_tile(S, E, cfg["tm"])
    hc = _hidden_chunk(D, H, cfg["weight_budget"])
    flat_e = topk_idx.reshape(-1).astype(jnp.int32)                   # (S,)
    oh = jax.nn.one_hot(flat_e, E, dtype=jnp.int32)                   # (S,E)
    counts = oh.sum(axis=0)                                           # (E,)
    rank = jnp.take_along_axis(jnp.cumsum(oh, axis=0) - oh,
                               flat_e[:, None], axis=1)[:, 0]         # (S,)
    padded_counts = ((counts + tm - 1) // tm) * tm
    padded_ends = jnp.cumsum(padded_counts)
    padded_offsets = padded_ends - padded_counts
    row_for_slot = padded_offsets[flat_e] + rank                      # (S,)

    R = _round_up(S + E * (tm - 1), tm)                               # static
    n_tiles = R // tm
    x_rows = jnp.zeros((R, D), jnp.bfloat16).at[row_for_slot].set(
        jnp.repeat(xf_bf, k, axis=0))
    tile_expert = jnp.minimum(
        jnp.searchsorted(padded_ends,
                         jnp.arange(n_tiles, dtype=jnp.int32) * tm,
                         side="right"),
        E - 1).astype(jnp.int32)

    # --- grouped expert GEMM + gather-back (no scatter on the hot path)
    expert_rows = grouped_expert_mlp_pallas(
        tile_expert, x_rows, p["w1"], p["b1"], p["w2"], p["b2"],
        tm=tm, hc=hc, vmem_limit=cfg["vmem_limit"])
    routed = expert_rows[row_for_slot.reshape(T, k)].sum(axis=1)      # (T,D)

    # --- shared expert + task-alpha blend (fused kernel)
    alpha = jax.nn.sigmoid(p["task_alphas"][task_ids])                # (B,)
    alpha = jnp.repeat(alpha, L).reshape(T, 1).astype(jnp.float32)
    routed_p = jnp.pad(routed, ((0, Tp - T), (0, 0)))
    alpha_p = jnp.pad(alpha, ((0, Tp - T), (0, 0)))
    y_p = shared_blend_pallas(xp_bf, routed_p, alpha_p,
                              p["ws1"], p["bs1"], p["ws2"], p["bs2"],
                              tt=TT, vmem_limit=cfg["vmem_limit"])
    return y_p[:T].reshape(B, L, D), loss


def deepseek_moe_block(x, task_ids, layer_params, k, cfg):
    aux = jnp.float32(0.0)
    for p in layer_params:
        x, l = deepseek_moe_layer(x, task_ids, p, k, cfg)
        aux = aux + l
    return x, aux


def moe_mlp_forward(x, task_ids, params, k, cfg):
    x, a1 = deepseek_moe_block(x, task_ids, params["block1"], k, cfg)
    x = jax.nn.gelu(x, approximate=False)   # nn.GELU between the two blocks
    x, a2 = deepseek_moe_block(x, task_ids, params["block2"], k, cfg)
    return x, a1 + a2


# ----------------------------------------------------------------------------
# Parameter init (f32, shapes from the module __init__) and one-time
# preparation (bf16 weight casts, lane-padded gate out-projection).
# ----------------------------------------------------------------------------
def init_layer_params(key, D, H, E, task_num):
    ks = jax.random.split(key, 13)

    def w(kk, shape, fan_in):
        return jax.random.normal(kk, shape, jnp.float32) * (1.0 / math.sqrt(fan_in))

    return dict(
        wg1=w(ks[0], (D, H), D), bg1=w(ks[1], (1, H), D),
        wg2=w(ks[2], (H, E), H) * 0.5, bg2=w(ks[3], (1, E), H),
        w1=w(ks[4], (E, D, H), D), b1=w(ks[5], (E, 1, H), D),
        w2=w(ks[6], (E, H, D), H), b2=w(ks[7], (E, 1, D), H),
        ws1=w(ks[8], (D, H), D), bs1=w(ks[9], (1, H), D),
        ws2=w(ks[10], (H, D), H), bs2=w(ks[11], (1, D), H),
        task_alphas=jax.random.normal(ks[12], (task_num,), jnp.float32) * 0.5,
    )


def prepare_layer_params(p):
    H, E = p["wg2"].shape
    Ep = max(128, _round_up(E, 128))          # lane-dense gate logits
    wg2p = jnp.zeros((H, Ep), jnp.bfloat16).at[:, :E].set(
        p["wg2"].astype(jnp.bfloat16))
    bg2p = jnp.zeros((1, Ep), jnp.float32).at[:, :E].set(p["bg2"])
    bf = lambda a: a.astype(jnp.bfloat16)
    return dict(
        wg1=bf(p["wg1"]), bg1=p["bg1"], wg2p=wg2p, bg2p=bg2p,
        w1=bf(p["w1"]), b1=p["b1"], w2=bf(p["w2"]), b2=p["b2"],
        ws1=bf(p["ws1"]), bs1=p["bs1"], ws2=bf(p["ws2"]), bs2=p["bs2"],
        task_alphas=p["task_alphas"],
    )


def init_params(key, D, H, E, task_num, num_moe_layers=2):
    keys = jax.random.split(key, 2 * num_moe_layers)
    return {
        "block1": [init_layer_params(keys[i], D, H, E, task_num)
                   for i in range(num_moe_layers)],
        "block2": [init_layer_params(keys[num_moe_layers + i], D, H, E, task_num)
                   for i in range(num_moe_layers)],
    }


def prepare_params(params):
    return {blk: [prepare_layer_params(p) for p in layers]
            for blk, layers in params.items()}


if __name__ == "__main__":
    B, L = 2, 8                 # batch, sequence length  -> T = 16 tokens
    D, H = 32, 32               # input_size, head_size (expert & gate hidden)
    E, K = 8, 2                 # num_experts, top-k
    TASKS = 9                   # task_num
    # NOTE: at D=H=32 the kernels are vreg-padding bound; realistic deployments
    # should use D,H that are multiples of 128 (the design assumes that).

    key = jax.random.PRNGKey(0)
    kx, kt, kp = jax.random.split(key, 3)
    x = jax.random.normal(kx, (B, L, D), jnp.float32)
    task_ids = jax.random.randint(kt, (B,), 0, TASKS)
    params = prepare_params(init_params(kp, D, H, E, TASKS))

    cfg = _hw_config()
    fwd = jax.jit(lambda xx, tt, pp: moe_mlp_forward(xx, tt, pp, K, cfg))
    y, aux_loss = fwd(x, task_ids, params)
    jax.block_until_ready((y, aux_loss))

    assert y.shape == (B, L, D) and y.dtype == jnp.float32
    assert aux_loss.shape == ()
    assert bool(jnp.all(jnp.isfinite(y)))
    print("KERNEL_OK")
</pallas_src>

<mosaic_0001>
module attributes {stable_mosaic.version = 11 : i64} {
  func.func @_gate_kernel(%arg0: i32, %arg1: memref<16x32xbf16, #tpu.memory_space<vmem>>, %arg2: memref<32x32xbf16, #tpu.memory_space<vmem>>, %arg3: memref<1x32xf32, #tpu.memory_space<vmem>>, %arg4: memref<32x128xbf16, #tpu.memory_space<vmem>>, %arg5: memref<1x128xf32, #tpu.memory_space<vmem>>, %arg6: memref<16x128xf32, #tpu.memory_space<vmem>>) attributes {dimension_semantics = [#tpu.dimension_semantics<parallel>], iteration_bounds = array<i64: 1>, scalar_prefetch = 0 : i64, scratch_operands = 0 : i64, tpu.core_type = #tpu.core_type<tc>, window_params = [{transform_indices = @transform_0, window_bounds = array<i64: 16, 32>}, {pipeline_mode = #tpu.pipeline_mode<synchronous>, transform_indices = @transform_1, window_bounds = array<i64: 32, 32>}, {pipeline_mode = #tpu.pipeline_mode<synchronous>, transform_indices = @transform_2, window_bounds = array<i64: 1, 32>}, {pipeline_mode = #tpu.pipeline_mode<synchronous>, transform_indices = @transform_3, window_bounds = array<i64: 32, 128>}, {pipeline_mode = #tpu.pipeline_mode<synchronous>, transform_indices = @transform_4, window_bounds = array<i64: 1, 128>}, {transform_indices = @transform_5, window_bounds = array<i64: 16, 128>}]} {
    %c0 = arith.constant 0 : index
    %c0_0 = arith.constant 0 : index
    %0 = vector.load %arg1[%c0, %c0_0] : memref<16x32xbf16, #tpu.memory_space<vmem>>, vector<16x32xbf16>
    %c0_1 = arith.constant 0 : index
    %c0_2 = arith.constant 0 : index
    %1 = vector.load %arg2[%c0_1, %c0_2] : memref<32x32xbf16, #tpu.memory_space<vmem>>, vector<32x32xbf16>
    %cst = arith.constant dense<0.000000e+00> : vector<16x32xf32>
    %2 = tpu.matmul %0, %1, %cst {dimension_numbers = #tpu.dot_dimension_numbers<[1], [0], [0], [1], [0, 0, 1, 1], [], []>} : vector<16x32xbf16>, vector<32x32xbf16>, vector<16x32xf32> -> vector<16x32xf32>
    %c0_3 = arith.constant 0 : index
    %c0_4 = arith.constant 0 : index
    %3 = vector.load %arg3[%c0_3, %c0_4] : memref<1x32xf32, #tpu.memory_space<vmem>>, vector<1x32xf32>
    %4 = vector.broadcast %3 : vector<1x32xf32> to vector<16x32xf32>
    %5 = arith.addf %2, %4 : vector<16x32xf32>
    %cst_5 = arith.constant 5.000000e-01 : f32
    %6 = vector.broadcast %cst_5 : f32 to vector<16x32xf32>
    %7 = arith.mulf %6, %5 : vector<16x32xf32>
    %cst_6 = arith.constant 0.707106769 : f32
    %8 = vector.broadcast %cst_6 : f32 to vector<16x32xf32>
    %9 = arith.mulf %5, %8 : vector<16x32xf32>
    %10 = math.absf %9 : vector<16x32xf32>
    %cst_7 = arith.constant 0.327591091 : f32
    %11 = vector.broadcast %cst_7 : f32 to vector<16x32xf32>
    %12 = arith.mulf %11, %10 : vector<16x32xf32>
    %cst_8 = arith.constant 1.000000e+00 : f32
    %13 = vector.broadcast %cst_8 : f32 to vector<16x32xf32>
    %14 = arith.addf %13, %12 : vector<16x32xf32>
    %cst_9 = arith.constant 1.000000e+00 : f32
    %15 = vector.broadcast %cst_9 : f32 to vector<16x32xf32>
    %16 = arith.divf %15, %14 : vector<16x32xf32>
    %cst_10 = arith.constant 1.06140542 : f32
    %17 = vector.broadcast %cst_10 : f32 to vector<16x32xf32>
    %18 = arith.mulf %17, %16 : vector<16x32xf32>
    %cst_11 = arith.constant -1.45315206 : f32
    %19 = vector.broadcast %cst_11 : f32 to vector<16x32xf32>
    %20 = arith.addf %18, %19 : vector<16x32xf32>
    %21 = arith.mulf %20, %16 : vector<16x32xf32>
    %cst_12 = arith.constant 1.42141378 : f32
    %22 = vector.broadcast %cst_12 : f32 to vector<16x32xf32>
    %23 = arith.addf %21, %22 : vector<16x32xf32>
    %24 = arith.mulf %23, %16 : vector<16x32xf32>
    %cst_13 = arith.constant -0.284496725 : f32
    %25 = vector.broadcast %cst_13 : f32 to vector<16x32xf32>
    %26 = arith.addf %24, %25 : vector<16x32xf32>
    %27 = arith.mulf %26, %16 : vector<16x32xf32>
    %cst_14 = arith.constant 0.254829586 : f32
    %28 = vector.broadcast %cst_14 : f32 to vector<16x32xf32>
    %29 = arith.addf %27, %28 : vector<16x32xf32>
    %30 = arith.mulf %29, %16 : vector<16x32xf32>
    %cst_15 = arith.constant 0.000000e+00 : f32
    %31 = vector.broadcast %cst_15 : f32 to vector<16x32xf32>
    %32 = arith.subf %31, %10 : vector<16x32xf32>
    %33 = arith.mulf %32, %10 : vector<16x32xf32>
    %34 = math.exp %33 : vector<16x32xf32>
    %35 = arith.mulf %30, %34 : vector<16x32xf32>
    %cst_16 = arith.constant 1.000000e+00 : f32
    %36 = vector.broadcast %cst_16 : f32 to vector<16x32xf32>
    %37 = arith.subf %36, %35 : vector<16x32xf32>
    %cst_17 = arith.constant 0.000000e+00 : f32
    %38 = vector.broadcast %cst_17 : f32 to vector<16x32xf32>
    %39 = arith.cmpf oge, %9, %38 : vector<16x32xf32>
    %cst_18 = arith.constant 0.000000e+00 : f32
    %40 = vector.broadcast %cst_18 : f32 to vector<16x32xf32>
    %41 = arith.subf %40, %37 : vector<16x32xf32>
    %42 = arith.select %39, %37, %41 : vector<16x32xi1>, vector<16x32xf32>
    %cst_19 = arith.constant 1.000000e+00 : f32
    %43 = vector.broadcast %cst_19 : f32 to vector<16x32xf32>
    %44 = arith.addf %43, %42 : vector<16x32xf32>
    %45 = arith.mulf %7, %44 : vector<16x32xf32>
    %46 = arith.truncf %45 : vector<16x32xf32> to vector<16x32xbf16>
    %c0_20 = arith.constant 0 : index
    %c0_21 = arith.constant 0 : index
    %47 = vector.load %arg4[%c0_20, %c0_21] : memref<32x128xbf16, #tpu.memory_space<vmem>>, vector<32x128xbf16>
    %cst_22 = arith.constant dense<0.000000e+00> : vector<16x128xf32>
    %48 = tpu.matmul %46, %47, %cst_22 {dimension_numbers = #tpu.dot_dimension_numbers<[1], [0], [0], [1], [0, 0, 1, 1], [], []>} : vector<16x32xbf16>, vector<32x128xbf16>, vector<16x128xf32> -> vector<16x128xf32>
    %c0_23 = arith.constant 0 : index
    %c0_24 = arith.constant 0 : index
    %49 = vector.load %arg5[%c0_23, %c0_24] : memref<1x128xf32, #tpu.memory_space<vmem>>, vector<1x128xf32>
    %50 = vector.broadcast %49 : vector<1x128xf32> to vector<16x128xf32>
    %51 = arith.addf %48, %50 : vector<16x128xf32>
    %c0_25 = arith.constant 0 : index
    %c0_26 = arith.constant 0 : index
    %52 = vector.load %arg6[%c0_25, %c0_26] : memref<16x128xf32, #tpu.memory_space<vmem>>, vector<16x128xf32>
    tpu.vector_store %arg6[%c0_25, %c0_26], %51 {strides = array<i32>} : memref<16x128xf32, #tpu.memory_space<vmem>>, vector<16x128xf32>,
    return
  }
  func.func @transform_0(%arg0: i32) -> (i32, i32) {
    %c0_i32 = arith.constant 0 : i32
    %c0_i32_0 = arith.constant 0 : i32
    return %arg0, %c0_i32 : i32, i32
  }
  func.func @transform_1(%arg0: i32) -> (i32, i32) {
    %c0_i32 = arith.constant 0 : i32
    %c0_i32_0 = arith.constant 0 : i32
    %c0_i32_1 = arith.constant 0 : i32
    return %c0_i32, %c0_i32_0 : i32, i32
  }
  func.func @transform_2(%arg0: i32) -> (i32, i32) {
    %c0_i32 = arith.constant 0 : i32
    %c0_i32_0 = arith.constant 0 : i32
    %c0_i32_1 = arith.constant 0 : i32
    return %c0_i32, %c0_i32_0 : i32, i32
  }
  func.func @transform_3(%arg0: i32) -> (i32, i32) {
    %c0_i32 = arith.constant 0 : i32
    %c0_i32_0 = arith.constant 0 : i32
    %c0_i32_1 = arith.constant 0 : i32
    return %c0_i32, %c0_i32_0 : i32, i32
  }
  func.func @transform_4(%arg0: i32) -> (i32, i32) {
    %c0_i32 = arith.constant 0 : i32
    %c0_i32_0 = arith.constant 0 : i32
    %c0_i32_1 = arith.constant 0 : i32
    return %c0_i32, %c0_i32_0 : i32, i32
  }
  func.func @transform_5(%arg0: i32) -> (i32, i32) {
    %c0_i32 = arith.constant 0 : i32
    %c0_i32_0 = arith.constant 0 : i32
    return %arg0, %c0_i32 : i32, i32
  }
}

module attributes {stable_mosaic.version = 11 : i64} {
  func.func @_grouped_expert_kernel(%arg0: i32, %arg1: i32, %arg2: memref<10xi32, #tpu.memory_space<smem>>, %arg3: memref<16x32xbf16, #tpu.memory_space<vmem>>, %arg4: memref<1x32x32xbf16, #tpu.memory_space<vmem>>, %arg5: memref<1x1x32xf32, #tpu.memory_space<vmem>>, %arg6: memref<1x32x32xbf16, #tpu.memory_space<vmem>>, %arg7: memref<1x1x32xf32, #tpu.memory_space<vmem>>, %arg8: memref<16x32xf32, #tpu.memory_space<vmem>>) attributes {dimension_semantics = [#tpu.dimension_semantics<parallel>, #tpu.dimension_semantics<arbitrary>], iteration_bounds = array<i64: 10, 1>, scalar_prefetch = 1 : i64, scratch_operands = 0 : i64, tpu.core_type = #tpu.core_type<tc>, window_params = [{transform_indices = @transform_0, window_bounds = array<i64: 16, 32>}, {transform_indices = @transform_1, window_bounds = array<i64: 1, 32, 32>}, {transform_indices = @transform_2, window_bounds = array<i64: 1, 1, 32>}, {transform_indices = @transform_3, window_bounds = array<i64: 1, 32, 32>}, {transform_indices = @transform_4, window_bounds = array<i64: 1, 1, 32>}, {transform_indices = @transform_5, window_bounds = array<i64: 16, 32>}]} {
    %c0_i32 = arith.constant 0 : i32
    %0 = arith.cmpi eq, %arg1, %c0_i32 : i32
    %1 = arith.extui %0 : i1 to i32
    %c0_i32_0 = arith.constant 0 : i32
    %2 = arith.cmpi ne, %1, %c0_i32_0 : i32
    scf.if %2 {
      %cst_20 = arith.constant 0.000000e+00 : f32
      %31 = vector.broadcast %cst_20 : f32 to vector<16x32xf32>
      %c0_21 = arith.constant 0 : index
      %c0_22 = arith.constant 0 : index
      %c0_23 = arith.constant 0 : index
      %32 = vector.load %arg7[%c0_21, %c0_22, %c0_23] : memref<1x1x32xf32, #tpu.memory_space<vmem>>, vector<1x1x32xf32>
      %33 = vector.shape_cast %32 : vector<1x1x32xf32> to vector<1x32xf32>
      %34 = vector.broadcast %33 : vector<1x32xf32> to vector<16x32xf32>
      %35 = arith.addf %31, %34 : vector<16x32xf32>
      %c0_24 = arith.constant 0 : index
      %c0_25 = arith.constant 0 : index
      %36 = vector.load %arg8[%c0_24, %c0_25] : memref<16x32xf32, #tpu.memory_space<vmem>>, vector<16x32xf32>
      tpu.vector_store %arg8[%c0_24, %c0_25], %35 {strides = array<i32>} : memref<16x32xf32, #tpu.memory_space<vmem>>, vector<16x32xf32>,
    } else {
    }
    %c0 = arith.constant 0 : index
    %c0_1 = arith.constant 0 : index
    %3 = vector.load %arg3[%c0, %c0_1] : memref<16x32xbf16, #tpu.memory_space<vmem>>, vector<16x32xbf16>
    %c0_2 = arith.constant 0 : index
    %c0_3 = arith.constant 0 : index
    %c0_4 = arith.constant 0 : index
    %4 = vector.load %arg4[%c0_2, %c0_3, %c0_4] : memref<1x32x32xbf16, #tpu.memory_space<vmem>>, vector<1x32x32xbf16>
    %5 = vector.shape_cast %4 : vector<1x32x32xbf16> to vector<32x32xbf16>
    %cst = arith.constant dense<0.000000e+00> : vector<16x32xf32>
    %6 = tpu.matmul %3, %5, %cst {dimension_numbers = #tpu.dot_dimension_numbers<[1], [0], [0], [1], [0, 0, 1, 1], [], []>} : vector<16x32xbf16>, vector<32x32xbf16>, vector<16x32xf32> -> vector<16x32xf32>
    %c0_5 = arith.constant 0 : index
    %c0_6 = arith.constant 0 : index
    %c0_7 = arith.constant 0 : index
    %7 = vector.load %arg5[%c0_5, %c0_6, %c0_7] : memref<1x1x32xf32, #tpu.memory_space<vmem>>, vector<1x1x32xf32>
    %8 = vector.shape_cast %7 : vector<1x1x32xf32> to vector<1x32xf32>
    %9 = vector.broadcast %8 : vector<1x32xf32> to vector<16x32xf32>
    %10 = arith.addf %6, %9 : vector<16x32xf32>
    %cst_8 = arith.constant 5.000000e-01 : f32
    %11 = vector.broadcast %cst_8 : f32 to vector<16x32xf32>
    %12 = arith.mulf %11, %10 : vector<16x32xf32>
    %cst_9 = arith.constant 4.471500e-02 : f32
    %13 = vector.broadcast %cst_9 : f32 to vector<16x32xf32>
    %14 = arith.mulf %13, %10 : vector<16x32xf32>
    %15 = arith.mulf %14, %10 : vector<16x32xf32>
    %16 = arith.mulf %15, %10 : vector<16x32xf32>
    %17 = arith.addf %10, %16 : vector<16x32xf32>
    %cst_10 = arith.constant 0.797884583 : f32
    %18 = vector.broadcast %cst_10 : f32 to vector<16x32xf32>
    %19 = arith.mulf %18, %17 : vector<16x32xf32>
    %20 = math.tanh %19 : vector<16x32xf32>
    %cst_11 = arith.constant 1.000000e+00 : f32
    %21 = vector.broadcast %cst_11 : f32 to vector<16x32xf32>
    %22 = arith.addf %21, %20 : vector<16x32xf32>
    %23 = arith.mulf %12, %22 : vector<16x32xf32>
    %c0_12 = arith.constant 0 : index
    %c0_13 = arith.constant 0 : index
    %24 = vector.load %arg8[%c0_12, %c0_13] : memref<16x32xf32, #tpu.memory_space<vmem>>, vector<16x32xf32>
    %25 = arith.truncf %23 : vector<16x32xf32> to vector<16x32xbf16>
    %c0_14 = arith.constant 0 : index
    %c0_15 = arith.constant 0 : index
    %c0_16 = arith.constant 0 : index
    %26 = vector.load %arg6[%c0_14, %c0_15, %c0_16] : memref<1x32x32xbf16, #tpu.memory_space<vmem>>, vector<1x32x32xbf16>
    %27 = vector.shape_cast %26 : vector<1x32x32xbf16> to vector<32x32xbf16>
    %cst_17 = arith.constant dense<0.000000e+00> : vector<16x32xf32>
    %28 = tpu.matmul %25, %27, %cst_17 {dimension_numbers = #tpu.dot_dimension_numbers<[1], [0], [0], [1], [0, 0, 1, 1], [], []>} : vector<16x32xbf16>, vector<32x32xbf16>, vector<16x32xf32> -> vector<16x32xf32>
    %29 = arith.addf %24, %28 : vector<16x32xf32>
    %c0_18 = arith.constant 0 : index
    %c0_19 = arith.constant 0 : index
    %30 = vector.load %arg8[%c0_18, %c0_19] : memref<16x32xf32, #tpu.memory_space<vmem>>, vector<16x32xf32>
    tpu.vector_store %arg8[%c0_18, %c0_19], %29 {strides = array<i32>} : memref<16x32xf32, #tpu.memory_space<vmem>>, vector<16x32xf32>,
    return
  }
  func.func @transform_0(%arg0: i32, %arg1: i32, %arg2: memref<10xi32, #tpu.memory_space<smem>>) -> (i32, i32) {
    %c0_i32 = arith.constant 0 : i32
    %c0_i32_0 = arith.constant 0 : i32
    return %arg0, %c0_i32 : i32, i32
  }
  func.func @transform_1(%arg0: i32, %arg1: i32, %arg2: memref<10xi32, #tpu.memory_space<smem>>) -> (i32, i32, i32) {
    %0 = arith.index_cast %arg0 : i32 to index
    %1 = memref.load %arg2[%0] : memref<10xi32, #tpu.memory_space<smem>>
    %c0_i32 = arith.constant 0 : i32
    %c0_i32_0 = arith.constant 0 : i32
    return %1, %c0_i32, %arg1 : i32, i32, i32
  }
  func.func @transform_2(%arg0: i32, %arg1: i32, %arg2: memref<10xi32, #tpu.memory_space<smem>>) -> (i32, i32, i32) {
    %0 = arith.index_cast %arg0 : i32 to index
    %1 = memref.load %arg2[%0] : memref<10xi32, #tpu.memory_space<smem>>
    %c0_i32 = arith.constant 0 : i32
    %c0_i32_0 = arith.constant 0 : i32
    return %1, %c0_i32, %arg1 : i32, i32, i32
  }
  func.func @transform_3(%arg0: i32, %arg1: i32, %arg2: memref<10xi32, #tpu.memory_space<smem>>) -> (i32, i32, i32) {
    %0 = arith.index_cast %arg0 : i32 to index
    %1 = memref.load %arg2[%0] : memref<10xi32, #tpu.memory_space<smem>>
    %c0_i32 = arith.constant 0 : i32
    %c0_i32_0 = arith.constant 0 : i32
    return %1, %arg1, %c0_i32 : i32, i32, i32
  }
  func.func @transform_4(%arg0: i32, %arg1: i32, %arg2: memref<10xi32, #tpu.memory_space<smem>>) -> (i32, i32, i32) {
    %0 = arith.index_cast %arg0 : i32 to index
    %1 = memref.load %arg2[%0] : memref<10xi32, #tpu.memory_space<smem>>
    %c0_i32 = arith.constant 0 : i32
    %c0_i32_0 = arith.constant 0 : i32
    %c0_i32_1 = arith.constant 0 : i32
    return %1, %c0_i32, %c0_i32_0 : i32, i32, i32
  }
  func.func @transform_5(%arg0: i32, %arg1: i32, %arg2: memref<10xi32, #tpu.memory_space<smem>>) -> (i32, i32) {
    %c0_i32 = arith.constant 0 : i32
    %c0_i32_0 = arith.constant 0 : i32
    return %arg0, %c0_i32 : i32, i32
  }
}

module attributes {stable_mosaic.version = 11 : i64} {
  func.func @_shared_blend_kernel(%arg0: i32, %arg1: memref<16x32xbf16, #tpu.memory_space<vmem>>, %arg2: memref<16x32xf32, #tpu.memory_space<vmem>>, %arg3: memref<16x1xf32, #tpu.memory_space<vmem>>, %arg4: memref<32x32xbf16, #tpu.memory_space<vmem>>, %arg5: memref<1x32xf32, #tpu.memory_space<vmem>>, %arg6: memref<32x32xbf16, #tpu.memory_space<vmem>>, %arg7: memref<1x32xf32, #tpu.memory_space<vmem>>, %arg8: memref<16x32xf32, #tpu.memory_space<vmem>>) attributes {dimension_semantics = [#tpu.dimension_semantics<parallel>], iteration_bounds = array<i64: 1>, scalar_prefetch = 0 : i64, scratch_operands = 0 : i64, tpu.core_type = #tpu.core_type<tc>, window_params = [{transform_indices = @transform_0, window_bounds = array<i64: 16, 32>}, {transform_indices = @transform_1, window_bounds = array<i64: 16, 32>}, {transform_indices = @transform_2, window_bounds = array<i64: 16, 1>}, {pipeline_mode = #tpu.pipeline_mode<synchronous>, transform_indices = @transform_3, window_bounds = array<i64: 32, 32>}, {pipeline_mode = #tpu.pipeline_mode<synchronous>, transform_indices = @transform_4, window_bounds = array<i64: 1, 32>}, {pipeline_mode = #tpu.pipeline_mode<synchronous>, transform_indices = @transform_5, window_bounds = array<i64: 32, 32>}, {pipeline_mode = #tpu.pipeline_mode<synchronous>, transform_indices = @transform_6, window_bounds = array<i64: 1, 32>}, {transform_indices = @transform_7, window_bounds = array<i64: 16, 32>}]} {
    %c0 = arith.constant 0 : index
    %c0_0 = arith.constant 0 : index
    %0 = vector.load %arg1[%c0, %c0_0] : memref<16x32xbf16, #tpu.memory_space<vmem>>, vector<16x32xbf16>
    %c0_1 = arith.constant 0 : index
    %c0_2 = arith.constant 0 : index
    %1 = vector.load %arg4[%c0_1, %c0_2] : memref<32x32xbf16, #tpu.memory_space<vmem>>, vector<32x32xbf16>
    %cst = arith.constant dense<0.000000e+00> : vector<16x32xf32>
    %2 = tpu.matmul %0, %1, %cst {dimension_numbers = #tpu.dot_dimension_numbers<[1], [0], [0], [1], [0, 0, 1, 1], [], []>} : vector<16x32xbf16>, vector<32x32xbf16>, vector<16x32xf32> -> vector<16x32xf32>
    %c0_3 = arith.constant 0 : index
    %c0_4 = arith.constant 0 : index
    %3 = vector.load %arg5[%c0_3, %c0_4] : memref<1x32xf32, #tpu.memory_space<vmem>>, vector<1x32xf32>
    %4 = vector.broadcast %3 : vector<1x32xf32> to vector<16x32xf32>
    %5 = arith.addf %2, %4 : vector<16x32xf32>
    %cst_5 = arith.constant 5.000000e-01 : f32
    %6 = vector.broadcast %cst_5 : f32 to vector<16x32xf32>
    %7 = arith.mulf %6, %5 : vector<16x32xf32>
    %cst_6 = arith.constant 4.471500e-02 : f32
    %8 = vector.broadcast %cst_6 : f32 to vector<16x32xf32>
    %9 = arith.mulf %8, %5 : vector<16x32xf32>
    %10 = arith.mulf %9, %5 : vector<16x32xf32>
    %11 = arith.mulf %10, %5 : vector<16x32xf32>
    %12 = arith.addf %5, %11 : vector<16x32xf32>
    %cst_7 = arith.constant 0.797884583 : f32
    %13 = vector.broadcast %cst_7 : f32 to vector<16x32xf32>
    %14 = arith.mulf %13, %12 : vector<16x32xf32>
    %15 = math.tanh %14 : vector<16x32xf32>
    %cst_8 = arith.constant 1.000000e+00 : f32
    %16 = vector.broadcast %cst_8 : f32 to vector<16x32xf32>
    %17 = arith.addf %16, %15 : vector<16x32xf32>
    %18 = arith.mulf %7, %17 : vector<16x32xf32>
    %19 = arith.truncf %18 : vector<16x32xf32> to vector<16x32xbf16>
    %c0_9 = arith.constant 0 : index
    %c0_10 = arith.constant 0 : index
    %20 = vector.load %arg6[%c0_9, %c0_10] : memref<32x32xbf16, #tpu.memory_space<vmem>>, vector<32x32xbf16>
    %cst_11 = arith.constant dense<0.000000e+00> : vector<16x32xf32>
    %21 = tpu.matmul %19, %20, %cst_11 {dimension_numbers = #tpu.dot_dimension_numbers<[1], [0], [0], [1], [0, 0, 1, 1], [], []>} : vector<16x32xbf16>, vector<32x32xbf16>, vector<16x32xf32> -> vector<16x32xf32>
    %c0_12 = arith.constant 0 : index
    %c0_13 = arith.constant 0 : index
    %22 = vector.load %arg7[%c0_12, %c0_13] : memref<1x32xf32, #tpu.memory_space<vmem>>, vector<1x32xf32>
    %23 = vector.broadcast %22 : vector<1x32xf32> to vector<16x32xf32>
    %24 = arith.addf %21, %23 : vector<16x32xf32>
    %c0_14 = arith.constant 0 : index
    %c0_15 = arith.constant 0 : index
    %25 = vector.load %arg3[%c0_14, %c0_15] : memref<16x1xf32, #tpu.memory_space<vmem>>, vector<16x1xf32>
    %c0_16 = arith.constant 0 : index
    %c0_17 = arith.constant 0 : index
    %26 = vector.load %arg2[%c0_16, %c0_17] : memref<16x32xf32, #tpu.memory_space<vmem>>, vector<16x32xf32>
    %27 = vector.broadcast %25 : vector<16x1xf32> to vector<16x32xf32>
    %28 = arith.mulf %27, %26 : vector<16x32xf32>
    %cst_18 = arith.constant 1.000000e+00 : f32
    %29 = vector.broadcast %cst_18 : f32 to vector<16x1xf32>
    %30 = arith.subf %29, %25 : vector<16x1xf32>
    %31 = vector.broadcast %30 : vector<16x1xf32> to vector<16x32xf32>
    %32 = arith.mulf %31, %24 : vector<16x32xf32>
    %33 = arith.addf %28, %32 : vector<16x32xf32>
    %c0_19 = arith.constant 0 : index
    %c0_20 = arith.constant 0 : index
    %34 = vector.load %arg8[%c0_19, %c0_20] : memref<16x32xf32, #tpu.memory_space<vmem>>, vector<16x32xf32>
    tpu.vector_store %arg8[%c0_19, %c0_20], %33 {strides = array<i32>} : memref<16x32xf32, #tpu.memory_space<vmem>>, vector<16x32xf32>,
    return
  }
  func.func @transform_0(%arg0: i32) -> (i32, i32) {
    %c0_i32 = arith.constant 0 : i32
    %c0_i32_0 = arith.constant 0 : i32
    return %arg0, %c0_i32 : i32, i32
  }
  func.func @transform_1(%arg0: i32) -> (i32, i32) {
    %c0_i32 = arith.constant 0 : i32
    %c0_i32_0 = arith.constant 0 : i32
    return %arg0, %c0_i32 : i32, i32
  }
  func.func @transform_2(%arg0: i32) -> (i32, i32) {
    %c0_i32 = arith.constant 0 : i32
    %c0_i32_0 = arith.constant 0 : i32
    return %arg0, %c0_i32 : i32, i32
  }
  func.func @transform_3(%arg0: i32) -> (i32, i32) {
    %c0_i32 = arith.constant 0 : i32
    %c0_i32_0 = arith.constant 0 : i32
    %c0_i32_1 = arith.constant 0 : i32
    return %c0_i32, %c0_i32_0 : i32, i32
  }
  func.func @transform_4(%arg0: i32) -> (i32, i32) {
    %c0_i32 = arith.constant 0 : i32
    %c0_i32_0 = arith.constant 0 : i32
    %c0_i32_1 = arith.constant 0 : i32
    return %c0_i32, %c0_i32_0 : i32, i32
  }
  func.func @transform_5(%arg0: i32) -> (i32, i32) {
    %c0_i32 = arith.constant 0 : i32
    %c0_i32_0 = arith.constant 0 : i32
    %c0_i32_1 = arith.constant 0 : i32
    return %c0_i32, %c0_i32_0 : i32, i32
  }
  func.func @transform_6(%arg0: i32) -> (i32, i32) {
    %c0_i32 = arith.constant 0 : i32
    %c0_i32_0 = arith.constant 0 : i32
    %c0_i32_1 = arith.constant 0 : i32
    return %c0_i32, %c0_i32_0 : i32, i32
  }
  func.func @transform_7(%arg0: i32) -> (i32, i32) {
    %c0_i32 = arith.constant 0 : i32
    %c0_i32_0 = arith.constant 0 : i32
    return %arg0, %c0_i32 : i32, i32
  }
}

module attributes {stable_mosaic.version = 11 : i64} {
  func.func @_shared_blend_kernel(%arg0: i32, %arg1: memref<16x32xbf16, #tpu.memory_space<vmem>>, %arg2: memref<16x32xf32, #tpu.memory_space<vmem>>, %arg3: memref<16x1xf32, #tpu.memory_space<vmem>>, %arg4: memref<32x32xbf16, #tpu.memory_space<vmem>>, %arg5: memref<1x32xf32, #tpu.memory_space<vmem>>, %arg6: memref<32x32xbf16, #tpu.memory_space<vmem>>, %arg7: memref<1x32xf32, #tpu.memory_space<vmem>>, %arg8: memref<16x32xf32, #tpu.memory_space<vmem>>) attributes {dimension_semantics = [#tpu.dimension_semantics<parallel>], iteration_bounds = array<i64: 1>, scalar_prefetch = 0 : i64, scratch_operands = 0 : i64, tpu.core_type = #tpu.core_type<tc>, window_params = [{transform_indices = @transform_0, window_bounds = array<i64: 16, 32>}, {transform_indices = @transform_1, window_bounds = array<i64: 16, 32>}, {transform_indices = @transform_2, window_bounds = array<i64: 16, 1>}, {pipeline_mode = #tpu.pipeline_mode<synchronous>, transform_indices = @transform_3, window_bounds = array<i64: 32, 32>}, {pipeline_mode = #tpu.pipeline_mode<synchronous>, transform_indices = @transform_4, window_bounds = array<i64: 1, 32>}, {pipeline_mode = #tpu.pipeline_mode<synchronous>, transform_indices = @transform_5, window_bounds = array<i64: 32, 32>}, {pipeline_mode = #tpu.pipeline_mode<synchronous>, transform_indices = @transform_6, window_bounds = array<i64: 1, 32>}, {transform_indices = @transform_7, window_bounds = array<i64: 16, 32>}]} {
    %c0 = arith.constant 0 : index
    %c0_0 = arith.constant 0 : index
    %0 = vector.load %arg1[%c0, %c0_0] : memref<16x32xbf16, #tpu.memory_space<vmem>>, vector<16x32xbf16>
    %c0_1 = arith.constant 0 : index
    %c0_2 = arith.constant 0 : index
    %1 = vector.load %arg4[%c0_1, %c0_2] : memref<32x32xbf16, #tpu.memory_space<vmem>>, vector<32x32xbf16>
    %cst = arith.constant dense<0.000000e+00> : vector<16x32xf32>
    %2 = tpu.matmul %0, %1, %cst {dimension_numbers = #tpu.dot_dimension_numbers<[1], [0], [0], [1], [0, 0, 1, 1], [], []>} : vector<16x32xbf16>, vector<32x32xbf16>, vector<16x32xf32> -> vector<16x32xf32>
    %c0_3 = arith.constant 0 : index
    %c0_4 = arith.constant 0 : index
    %3 = vector.load %arg5[%c0_3, %c0_4] : memref<1x32xf32, #tpu.memory_space<vmem>>, vector<1x32xf32>
    %4 = vector.broadcast %3 : vector<1x32xf32> to vector<16x32xf32>
    %5 = arith.addf %2, %4 : vector<16x32xf32>
    %cst_5 = arith.constant 5.000000e-01 : f32
    %6 = vector.broadcast %cst_5 : f32 to vector<16x32xf32>
    %7 = arith.mulf %6, %5 : vector<16x32xf32>
    %cst_6 = arith.constant 4.471500e-02 : f32
    %8 = vector.broadcast %cst_6 : f32 to vector<16x32xf32>
    %9 = arith.mulf %8, %5 : vector<16x32xf32>
    %10 = arith.mulf %9, %5 : vector<16x32xf32>
    %11 = arith.mulf %10, %5 : vector<16x32xf32>
    %12 = arith.addf %5, %11 : vector<16x32xf32>
    %cst_7 = arith.constant 0.797884583 : f32
    %13 = vector.broadcast %cst_7 : f32 to vector<16x32xf32>
    %14 = arith.mulf %13, %12 : vector<16x32xf32>
    %15 = math.tanh %14 : vector<16x32xf32>
    %cst_8 = arith.constant 1.000000e+00 : f32
    %16 = vector.broadcast %cst_8 : f32 to vector<16x32xf32>
    %17 = arith.addf %16, %15 : vector<16x32xf32>
    %18 = arith.mulf %7, %17 : vector<16x32xf32>
    %19 = arith.truncf %18 : vector<16x32xf32> to vector<16x32xbf16>
    %c0_9 = arith.constant 0 : index
    %c0_10 = arith.constant 0 : index
    %20 = vector.load %arg6[%c0_9, %c0_10] : memref<32x32xbf16, #tpu.memory_space<vmem>>, vector<32x32xbf16>
    %cst_11 = arith.constant dense<0.000000e+00> : vector<16x32xf32>
    %21 = tpu.matmul %19, %20, %cst_11 {dimension_numbers = #tpu.dot_dimension_numbers<[1], [0], [0], [1], [0, 0, 1, 1], [], []>} : vector<16x32xbf16>, vector<32x32xbf16>, vector<16x32xf32> -> vector<16x32xf32>
    %c0_12 = arith.constant 0 : index
    %c0_13 = arith.constant 0 : index
    %22 = vector.load %arg7[%c0_12, %c0_13] : memref<1x32xf32, #tpu.memory_space<vmem>>, vector<1x32xf32>
    %23 = vector.broadcast %22 : vector<1x32xf32> to vector<16x32xf32>
    %24 = arith.addf %21, %23 : vector<16x32xf32>
    %c0_14 = arith.constant 0 : index
    %c0_15 = arith.constant 0 : index
    %25 = vector.load %arg3[%c0_14, %c0_15] : memref<16x1xf32, #tpu.memory_space<vmem>>, vector<16x1xf32>
    %c0_16 = arith.constant 0 : index
    %c0_17 = arith.constant 0 : index
    %26 = vector.load %arg2[%c0_16, %c0_17] : memref<16x32xf32, #tpu.memory_space<vmem>>, vector<16x32xf32>
    %27 = vector.broadcast %25 : vector<16x1xf32> to vector<16x32xf32>
    %28 = arith.mulf %27, %26 : vector<16x32xf32>
    %cst_18 = arith.constant 1.000000e+00 : f32
    %29 = vector.broadcast %cst_18 : f32 to vector<16x1xf32>
    %30 = arith.subf %29, %25 : vector<16x1xf32>
    %31 = vector.broadcast %30 : vector<16x1xf32> to vector<16x32xf32>
    %32 = arith.mulf %31, %24 : vector<16x32xf32>
    %33 = arith.addf %28, %32 : vector<16x32xf32>
    %c0_19 = arith.constant 0 : index
    %c0_20 = arith.constant 0 : index
    %34 = vector.load %arg8[%c0_19, %c0_20] : memref<16x32xf32, #tpu.memory_space<vmem>>, vector<16x32xf32>
    tpu.vector_store %arg8[%c0_19, %c0_20], %33 {strides = array<i32>} : memref<16x32xf32, #tpu.memory_space<vmem>>, vector<16x32xf32>,
    return
  }
  func.func @transform_0(%arg0: i32) -> (i32, i32) {
    %c0_i32 = arith.constant 0 : i32
    %c0_i32_0 = arith.constant 0 : i32
    return %arg0, %c0_i32 : i32, i32
  }
  func.func @transform_1(%arg0: i32) -> (i32, i32) {
    %c0_i32 = arith.constant 0 : i32
    %c0_i32_0 = arith.constant 0 : i32
    return %arg0, %c0_i32 : i32, i32
  }
  func.func @transform_2(%arg0: i32) -> (i32, i32) {
    %c0_i32 = arith.constant 0 : i32
    %c0_i32_0 = arith.constant 0 : i32
    return %arg0, %c0_i32 : i32, i32
  }
  func.func @transform_3(%arg0: i32) -> (i32, i32) {
    %c0_i32 = arith.constant 0 : i32
    %c0_i32_0 = arith.constant 0 : i32
    %c0_i32_1 = arith.constant 0 : i32
    return %c0_i32, %c0_i32_0 : i32, i32
  }
  func.func @transform_4(%arg0: i32) -> (i32, i32) {
    %c0_i32 = arith.constant 0 : i32
    %c0_i32_0 = arith.constant 0 : i32
    %c0_i32_1 = arith.constant 0 : i32
    return %c0_i32, %c0_i32_0 : i32, i32
  }
  func.func @transform_5(%arg0: i32) -> (i32, i32) {
    %c0_i32 = arith.constant 0 : i32
    %c0_i32_0 = arith.constant 0 : i32
    %c0_i32_1 = arith.constant 0 : i32
    return %c0_i32, %c0_i32_0 : i32, i32
  }
  func.func @transform_6(%arg0: i32) -> (i32, i32) {
    %c0_i32 = arith.constant 0 : i32
    %c0_i32_0 = arith.constant 0 : i32
    %c0_i32_1 = arith.constant 0 : i32
    return %c0_i32, %c0_i32_0 : i32, i32
  }
  func.func @transform_7(%arg0: i32) -> (i32, i32) {
    %c0_i32 = arith.constant 0 : i32
    %c0_i32_0 = arith.constant 0 : i32
    return %arg0, %c0_i32 : i32, i32
  }
}

</mosaic_0001>

<bundles_post_ra>
// kernel: eq.1
= control target key start
LH: loop header
LB: loop body
LE: loop exit
PB: predicated region body
PF: predicated region fallthrough
CT: control target
= control target key end

     0   :  { %s131_s10 = smov 30   ;;  %s132_s11 = smov 26   ;;  %vm3_vm0 = vcmask 15360   ;;  %vm9_vm1 = vcmask 261360   ;;  %vm15_vm2 = vcmask 244960   ;;  %vm21_vm3 = vcmask 228560   ;;  %s207_s0 = inlined_call_operand.vmem [shape: s32[16,2], index: 0, kind: input, shape index: {}]   ;;  %s208_s1 = inlined_call_operand.vmem [shape: s32[32], index: 1, kind: output, shape index: {}]  }
   0x1   :  { %v101_v0 = vld [vmem:[%s207_s0 + $0xf] sm:$0x1]   ;;  %v103_v1 = vld [vmem:[%s207_s0 + $0xd] sm:$0x1]   ;;  %v105_v2 = vld [vmem:[%s207_s0 + $0xb] sm:$0x1]  }
   0x2   :  { %7 = vrot.lane.b32.xlu0 %v101_v0, %s131_s10  ;;  %19 = vrot.lane.b32.xlu1 %v103_v1, %s132_s11  ;;  %s133_s14 = smov 22   ;;  %v102_v3 = vld [vmem:[%s207_s0 + $0xe] sm:$0x1]   ;;  %v104_v4 = vld [vmem:[%s207_s0 + $0xc] sm:$0x1]   ;;  %s134_s19 = smov 28  }
   0x3   :  { %31 = vrot.lane.b32.xlu2 %v105_v2, %s133_s14  ;;  %s135_s20 = smov 24   ;;  %v106_v5 = vld [vmem:[%s207_s0 + $0xa] sm:$0x1]   ;;  %s136_s23 = smov 20   ;;  %v107_v6 = vld [vmem:[%s207_s0 + $0x9] sm:$0x1]  }
   0x4   :  { %v108_v7 = vld [vmem:[%s207_s0 + $0x8] sm:$0x1]   ;;  %s137_s28 = smov 18   ;;  %s138_s29 = smov 16   ;;  %v109_v8 = vld [vmem:[%s207_s0 + $0x7] sm:$0x1]  }
   0x5   :  { %s139_s3 = smov 14   ;;  %v110_v9 = vld [vmem:[%s207_s0 + $0x6] sm:$0x1]   ;;  %v111_v10 = vld [vmem:[%s207_s0 + $0x5] sm:$0x1]   ;;  %s140_s8 = smov 12  }
   0x6   :  { %s141_s9 = smov 10   ;;  %v112_v11 = vld [vmem:[%s207_s0 + $0x4] sm:$0x1]   ;;  %s142_s12 = smov 8   ;;  %v113_v12 = vld [vmem:[%s207_s0 + $0x3] sm:$0x1]  }
   0x7   :  { %v114_v13 = vld [vmem:[%s207_s0 + $0x2] sm:$0x1]   ;;  %s143_s17 = smov 6   ;;  %s144_s18 = smov 4   ;;  %v115_v14 = vld [vmem:[%s207_s0 + $0x1] sm:$0x1]  }
   0x8   :  { %s145_s21 = smov 2   ;;  %v2_v15 = vld [vmem:[%s207_s0] sm:$0x1]   ;;  %vm27_vm4 = vcmask 212160   ;;  %vm33_vm5 = vcmask 195760   ;;  %vm39_vm6 = vcmask 179360  }
   0x9   :  { %4 = vst.msk [vmem:[#allocation0] sm:$0x1] %vm3_vm0, %v2_v15   ;;  %vm45_vm7 = vcmask 162960   ;;  %vm51_vm8 = vcmask 146560   ;;  %vm57_vm9 = vcmask 130160   ;;  %vm63_vm10 = vcmask 113760  }
   0xa   :  { %13 = vrot.lane.b32.xlu0 %v102_v3, %s134_s19  ;;  %25 = vrot.lane.b32.xlu1 %v104_v4, %s135_s20  ;;  %vm69_vm11 = vcmask 97360   ;;  %vm75_vm12 = vcmask 80960   ;;  %vm81_vm13 = vcmask 64560   ;;  %vm87_vm14 = vcmask 48160  }
   0xb   :  { %37 = vrot.lane.b32.xlu2 %v106_v5, %s136_s23  ;;  %vm93_vm15 = vcmask 31760  }
  0x12   :  { %43 = vrot.lane.b32.xlu0 %v107_v6, %s137_s28  ;;  %49 = vrot.lane.b32.xlu1 %v108_v7, %s138_s29 }
  0x13   :  { %55 = vrot.lane.b32.xlu2 %v109_v8, %s139_s3 }
  0x1a   :  { %61 = vrot.lane.b32.xlu0 %v110_v9, %s140_s8  ;;  %67 = vrot.lane.b32.xlu1 %v111_v10, %s141_s9 }
  0x1b   :  { %73 = vrot.lane.b32.xlu2 %v112_v11, %s142_s12 }
  0x22   :  { %79 = vrot.lane.b32.xlu0 %v113_v12, %s143_s17  ;;  %85 = vrot.lane.b32.xlu1 %v114_v13, %s144_s18 }
  0x23   :  { %91 = vrot.lane.b32.xlu2 %v115_v14, %s145_s21 }
  0x5d   :  { %v32_v16 = vpop.permute.xlu2 %31  }
  0x65   :  { %v38_v17 = vpop.permute.xlu2 %37  }
  0x6d   :  { %v56_v18 = vpop.permute.xlu2 %55  }
  0x74   :  { %v8_v19 = vpop.permute.xlu0 %7   ;;  %v20_v20 = vpop.permute.xlu1 %19  }
  0x75   :  { %10 = vst.msk [vmem:[#allocation0] sm:$0x1] %vm9_vm1, %v8_v19   ;;  %v74_v21 = vpop.permute.xlu2 %73  }
  0x7c   :  { %v14_v22 = vpop.permute.xlu0 %13   ;;  %v26_v23 = vpop.permute.xlu1 %25  }
  0x7d   :  { %16 = vst.msk [vmem:[#allocation0] sm:$0x1] %vm15_vm2, %v14_v22   ;;  %v92_v24 = vpop.permute.xlu2 %91  }
  0x7e   :  { %22 = vst.msk [vmem:[#allocation0] sm:$0x1] %vm21_vm3, %v20_v20  }
  0x7f   :  { %28 = vst.msk [vmem:[#allocation0] sm:$0x1] %vm27_vm4, %v26_v23  }
  0x80   :  { %34 = vst.msk [vmem:[#allocation0] sm:$0x1] %vm33_vm5, %v32_v16  }
  0x81   :  { %40 = vst.msk [vmem:[#allocation0] sm:$0x1] %vm39_vm6, %v38_v17  }
  0x84   :  { %v44_v25 = vpop.permute.xlu0 %43   ;;  %v50_v26 = vpop.permute.xlu1 %49  }
  0x85   :  { %46 = vst.msk [vmem:[#allocation0] sm:$0x1] %vm45_vm7, %v44_v25  }
  0x86   :  { %52 = vst.msk [vmem:[#allocation0] sm:$0x1] %vm51_vm8, %v50_v26  }
  0x87   :  { %58 = vst.msk [vmem:[#allocation0] sm:$0x1] %vm57_vm9, %v56_v18  }
  0x8c   :  { %v62_v27 = vpop.permute.xlu0 %61   ;;  %v68_v28 = vpop.permute.xlu1 %67  }
  0x8d   :  { %64 = vst.msk [vmem:[#allocation0] sm:$0x1] %vm63_vm10, %v62_v27  }
  0x8e   :  { %70 = vst.msk [vmem:[#allocation0] sm:$0x1] %vm69_vm11, %v68_v28  }
  0x8f   :  { %76 = vst.msk [vmem:[#allocation0] sm:$0x1] %vm75_vm12, %v74_v21  }
  0x94   :  { %v80_v29 = vpop.permute.xlu0 %79   ;;  %v86_v30 = vpop.permute.xlu1 %85  }
  0x95   :  { %82 = vst.msk [vmem:[#allocation0] sm:$0x1] %vm81_vm13, %v80_v29  }
  0x96   :  { %88 = vst.msk [vmem:[#allocation0] sm:$0x1] %vm87_vm14, %v86_v30  }
  0x97   :  { %94 = vst.msk [vmem:[#allocation0] sm:$0x1] %vm93_vm15, %v92_v24  }
  0x9e   :  { %v97_v31 = vld [vmem:[#allocation0] sm:$0x1] }
  0x9f   :  { %100 = vst [vmem:[%s208_s1] sm:$0x1] %v97_v31 }

// kernel: custom-call.8
= control target key start
LH: loop header
LB: loop body
LE: loop exit
PB: predicated region body
PF: predicated region fallthrough
CT: control target
= control target key end

     0   :  { %s6_s0 = inlined_call_operand.vmem [shape: u32[10], index: 0, kind: output, shape index: {}]  }

// kernel: _lambda_.12
= control target key start
LH: loop header
LB: loop body
LE: loop exit
PB: predicated region body
PF: predicated region fallthrough
CT: control target
= control target key end

     0   :  { %vm48_vm0 = vcmask 261120   ;;  %s302_s1 = inlined_call_operand.vmem [shape: bf16[32,32], index: 1, kind: input, shape index: {}]   ;;  %s303_s2 = inlined_call_operand.vmem [shape: f32[1,32], index: 2, kind: input, shape index: {}]   ;;  %s304_s0 = inlined_call_operand.vmem [shape: bf16[16,32], index: 0, kind: input, shape index: {}]   ;;  %s305_s4 = inlined_call_operand.vmem [shape: f32[1,128], index: 4, kind: input, shape index: {}]   ;;  %s306_s3 = inlined_call_operand.vmem [shape: bf16[32,128], index: 3, kind: input, shape index: {}]   ;;  %s307_s5 = inlined_call_operand.vmem [shape: f32[16,128], index: 5, kind: output, shape index: {}]  }
   0x1   :  { %v214_v0 = vld [vmem:[%s302_s1 + $0x8] sm:$0xff]  ;;  %v213_v1 = vld [vmem:[%s302_s1] sm:$0xff] }
   0x2   :  { %58 = vmatpush.bf16.msra.mxu0 %v214_v0  ;;  %v212_v2 = vld [vmem:[%s304_s0] sm:$0xff]  ;;  %v216_v30 = vld [vmem:[%s306_s3 + $0x8] sm:$0xff] }
   0x3   :  { %v217_v3 = vld [vmem:[%s303_s2] ss:$0 sm:$0xff]  ;;  %176 = vmatpush.bf16.msra.mxu1 %v216_v30 }
   0x4   :  { %v215_v38 = vld [vmem:[%s306_s3] sm:$0xff] }
   0x6   :  { %59 = vmatpush.bf16.msra.mxu0 %v213_v1 }
   0x7   :  { %177 = vmatpush.bf16.msra.mxu1 %v215_v38 }
   0x9   :  { %202 = vmatmul.msk.bf16.vlgmr.msra.gmra.mxu0 %vm48_vm0, %v212_v2 }
  0x86   :  { %v61_v4 = vpop.f32.mrf.mxu0 }
  0x87   :  { %v270_v5 = vadd.f32 %v217_v3, %v61_v4 }
  0x89   :  { %v273_v6 = vmul.f32 0.70710677, %v270_v5 }
  0x8b   :  { %v70_v7 = vand.u32 2147483647, %v273_v6  ;;  %vm136_vm9 = vcmp.ge.f32.partialorder %v273_v6, 0.0  ;;  %v218_v6 = vld [vmem:[%s305_s4] ss:$0 sm:$0xff] }
  0x8d   :  { %v72_v8 = vmul.f32 0.3275911, %v70_v7  ;;  %v124_v27 = vsub.f32 0.0, %v70_v7 }
  0x8e   :  { %v63_v9 = vpop.f32.mrf.mxu0 }
  0x8f   :  { %v74_v10 = vadd.f32 1.0, %v72_v8  ;;  %v276_v11 = vadd.f32 %v217_v3, %v63_v9  ;;  %v126_v34 = vmul.f32 %v124_v27, %v70_v7 }
  0x91   :  { %219 = vrcp.f32 %v74_v10  ;;  %v279_v12 = vmul.f32 0.70710677, %v276_v11  ;;  %v87_v19 = vand.u32 2147483648, %v74_v10  ;;  %v85_v21 = vand.u32 2147483647, %v74_v10 }
  0x92   :  { %vm81_vm2 = vweird.f32 %v74_v10  ;;  %v128_v42 = vmul.f32 1.442695, %v126_v34 }
  0x93   :  { %v71_v13 = vand.u32 2147483647, %v279_v12  ;;  %v88_v23 = vor.u32 1.1754944e-38, %v87_v19  ;;  %vm86_vm4 = vcmp.eq.f32.partialorder %v85_v21, 8.507059e+37  ;;  %vm137_vm10 = vcmp.ge.f32.partialorder %v279_v12, 0.0 }
  0x95   :  { %v73_v14 = vmul.f32 0.3275911, %v71_v13  ;;  %v125_v46 = vsub.f32 0.0, %v71_v13 }
  0x97   :  { %v220_v15 = vpop.eup %219  ;;  %v75_v17 = vadd.f32 1.0, %v73_v14  ;;  %v127_v51 = vmul.f32 %v125_v46, %v71_v13  ;;  %v66_v13 = vmul.f32 0.5, %v270_v5  ;;  %v67_v14 = vmul.f32 0.5, %v276_v11 }
  0x98   :  { %v77_v16 = vmul.f32 %v220_v15, %v74_v10  ;;  %vm82_vm1 = vweird.f32 %v220_v15 }
  0x99   :  { %221 = vrcp.f32 %v75_v17  ;;  %vm83_vm3 = vmor %vm81_vm2, %vm82_vm1  ;;  %v102_v33 = vand.u32 2147483648, %v75_v17  ;;  %v100_v36 = vand.u32 2147483647, %v75_v17  ;;  %vm96_vm6 = vweird.f32 %v75_v17 }
  0x9a   :  { %v78_v18 = vsub.f32 1.0, %v77_v16  ;;  %223 = vpow2.f32 %v128_v42  ;;  %v130_v56 = vmul.f32 1.442695, %v127_v51 }
  0x9b   :  { %v103_v41 = vor.u32 1.1754944e-38, %v102_v33  ;;  %vm101_vm8 = vcmp.eq.f32.partialorder %v100_v36, 8.507059e+37 }
  0x9c   :  { %v79_v20 = vmul.f32 %v220_v15, %v78_v18  ;;  %225 = vpow2.f32 %v130_v56 }
  0x9e   :  { %v80_v22 = vadd.f32 %v220_v15, %v79_v20 }
  0x9f   :  { %v222_v24 = vpop.eup %221 }
  0xa0   :  { %v84_v25 = vsel %vm83_vm3, %v220_v15, %v80_v22  ;;  %v92_v28 = vmul.f32 %v222_v24, %v75_v17  ;;  %vm97_vm5 = vweird.f32 %v222_v24  ;;  %v224_v57 = vpop.eup %223 }
  0xa1   :  { %v89_v26 = vsel %vm86_vm4, %v88_v23, %v84_v25  ;;  %vm98_vm7 = vmor %vm96_vm6, %vm97_vm5 }
  0xa2   :  { %v106_v29 = vmul.f32 1.0614054, %v89_v26  ;;  %v93_v31 = vsub.f32 1.0, %v92_v28  ;;  %v226_v2 = vpop.eup %225 }
  0xa4   :  { %v108_v32 = vadd.f32 -1.4531521, %v106_v29  ;;  %v94_v35 = vmul.f32 %v222_v24, %v93_v31 }
  0xa6   :  { %v110_v37 = vmul.f32 %v108_v32, %v89_v26  ;;  %v95_v39 = vadd.f32 %v222_v24, %v94_v35 }
  0xa8   :  { %v112_v40 = vadd.f32 1.4214138, %v110_v37  ;;  %v99_v43 = vsel %vm98_vm7, %v222_v24, %v95_v39 }
  0xa9   :  { %v104_v45 = vsel %vm101_vm8, %v103_v41, %v99_v43 }
  0xaa   :  { %v114_v44 = vmul.f32 %v112_v40, %v89_v26  ;;  %v107_v47 = vmul.f32 1.0614054, %v104_v45 }
  0xac   :  { %v116_v48 = vadd.f32 -0.28449672, %v114_v44  ;;  %v109_v49 = vadd.f32 -1.4531521, %v107_v47 }
  0xae   :  { %v118_v50 = vmul.f32 %v116_v48, %v89_v26  ;;  %v111_v52 = vmul.f32 %v109_v49, %v104_v45 }
  0xb0   :  { %v120_v53 = vadd.f32 0.2548296, %v118_v50  ;;  %v113_v54 = vadd.f32 1.4214138, %v111_v52 }
  0xb2   :  { %v122_v55 = vmul.f32 %v120_v53, %v89_v26  ;;  %v115_v58 = vmul.f32 %v113_v54, %v104_v45 }
  0xb4   :  { %v132_v59 = vmul.f32 %v224_v57, %v122_v55  ;;  %v117_v60 = vadd.f32 -0.28449672, %v115_v58 }
  0xb6   :  { %v134_v61 = vsub.f32 1.0, %v132_v59  ;;  %v119_v62 = vmul.f32 %v117_v60, %v104_v45 }
  0xb8   :  { %v121_v63 = vadd.f32 0.2548296, %v119_v62  ;;  %v138_v0 = vsub.f32 0.0, %v134_v61 }
  0xba   :  { %v123_v1 = vmul.f32 %v121_v63, %v104_v45  ;;  %v140_v4 = vsel %vm136_vm9, %v134_v61, %v138_v0 }
  0xbb   :  { %v142_v9 = vadd.f32 1.0, %v140_v4 }
  0xbc   :  { %v133_v3 = vmul.f32 %v226_v2, %v123_v1 }
  0xbd   :  { %v144_v16 = vmul.f32 %v142_v9, %v66_v13 }
  0xbe   :  { %v135_v7 = vsub.f32 1.0, %v133_v3 }
  0xc0   :  { %v139_v8 = vsub.f32 0.0, %v135_v7 }
  0xc2   :  { %v141_v10 = vsel %vm137_vm10, %v135_v7, %v139_v8 }
  0xc3   :  { %v143_v15 = vadd.f32 1.0, %v141_v10 }
  0xc5   :  { %v145_v17 = vmul.f32 %v143_v15, %v67_v14 }
  0xc7   :  { %v146_v18 = vpack.c.bf16 %v145_v17, %v144_v16 }
  0xc9   :  { %211 = vmatmul.msk.bf16.vlgmr.msra.gmra.mxu1 %vm48_vm0, %v146_v18 }
 0x146   :  { %v179_v19 = vpop.f32.mrf.mxu1 }
 0x147   :  { %v180_v20 = vadd.f32 %v218_v6, %v179_v19 }
 0x149   :  { %184 = vst [vmem:[%s307_s5] sm:$0xff] %v180_v20 }
 0x14e   :  { %v181_v12 = vpop.f32.mrf.mxu1 }
 0x14f   :  { %v182_v5 = vadd.f32 %v218_v6, %v181_v12 }
 0x151   :  { %185 = vst [vmem:[%s307_s5 + $0x8] sm:$0xff] %v182_v5 }

// kernel: eq.43
= control target key start
LH: loop header
LB: loop body
LE: loop exit
PB: predicated region body
PF: predicated region fallthrough
CT: control target
= control target key end

     0   :  { %vm7_vm0 = vcmask 64512   ;;  %vm13_vm1 = vcmask 130112   ;;  %s39_s0 = inlined_call_operand.vmem [shape: s32[2,8], index: 0, kind: input, shape index: {}]   ;;  %s40_s1 = inlined_call_operand.vmem [shape: s32[16], index: 1, kind: output, shape index: {}]  }
   0x1   :  { %v4_v0 = vld [vmem:[%s39_s0] sm:$0x3]  ;;  %s22_s0 = smov 8  }
   0x2   :  { %5 = vst [vmem:[#allocation1] sm:$0x3] %v4_v0 }
   0x9   :  { %v10_v1 = vld [vmem:[#allocation1 + $0x1] sm:$0x1]   ;;  %v6_v2 = vld [vmem:[#allocation1] sm:$0x1]  }
   0xa   :  { %11 = vrot.lane.b32.xlu0 %v10_v1, %s22_s0  ;;  %8 = vst.msk [vmem:[#allocation0] sm:$0x1] %vm7_vm0, %v6_v2  }
  0x7c   :  { %v12_v3 = vpop.permute.xlu0 %11  }
  0x7d   :  { %14 = vst.msk [vmem:[#allocation0] sm:$0x1] %vm13_vm1, %v12_v3  }
  0x84   :  { %v17_v4 = vld [vmem:[#allocation0] sm:$0x1] }
  0x85   :  { %20 = vst [vmem:[%s40_s1] sm:$0x1] %v17_v4 }

// kernel: _lambda_.13
= control target key start
LH: loop header
LB: loop body
LE: loop exit
PB: predicated region body
PF: predicated region fallthrough
CT: control target
= control target key end

     0   :  { %s734_s24 = smov [#allocation3]   ;;  %s843_s0 = inlined_call_operand.vmem [shape: s32[10], index: 0, kind: input, shape index: {}]   ;;  %s844_s1 = inlined_call_operand.vmem [shape: bf16[160,32], index: 1, kind: input, shape index: {}]   ;;  %s845_s2 = inlined_call_operand.vmem [shape: bf16[8,32,32], index: 2, kind: input, shape index: {}]   ;;  %s846_s3 = inlined_call_operand.vmem [shape: f32[8,1,32], index: 3, kind: input, shape index: {}]   ;;  %s847_s4 = inlined_call_operand.vmem [shape: bf16[8,32,32], index: 4, kind: input, shape index: {}]   ;;  %s848_s5 = inlined_call_operand.vmem [shape: f32[8,1,32], index: 5, kind: input, shape index: {}]   ;;  %s849_s6 = inlined_call_operand.vmem [shape: f32[160,32], index: 6, kind: output, shape index: {}]  }
   0x1   :  { %s12_s23 = sshll.u32 %s843_s0, 4  ;;  %s13_s23 = int_to_ptr.vmem [resolvable:$true] %s12_s23 }
   0x2   :  { %15 = dma.vmem_to_smem %s13_s23, 16, %s734_s24, [#allocation2] }
   0x3   :  { %720 = dma.done.wait [#allocation2], 16 }
   0x4   :  { %721 = vsyncadd [#allocation2], 4294967280 }
   0x5   :  { %18 = sfence }
   0x6   :  { %s773_s25 = smov 0   ;;  %s775_s26 = smov 0  }
   0x7   :  { %s777_s27 = smov 0  }
   0x8 LB: > { %s36_s0 = sadd.s32 1, %s728_s26  ;;  %p625_p0 = scmp.ge.s32.totalorder %s732_s27, 1  ;;  %s732_s27 = sphi %s777_s27, %s24_s27   ;;  %s728_s26 = sphi %s775_s26, %s851_s26   ;;  %s724_s25 = sphi %s773_s25, %s850_s25  }
   0x9   : > { %p38_p1 = scmp.ge.s32.totalorder %s36_s0, 10  ;;  %p278_p2 = scmp.lt.s32.totalorder %s732_s27, 11 }
   0xb   : > { %s853_s0 = smov (%p38_p1, %s36_s0), 0  ;;  %p279_p3 = pnand %p625_p0, %p278_p2 }
   0xc   : > { %s342_s28 = sld [smem:[#allocation3 + %s724_s25]] (!%p279_p3)  ;;  %s626_s29 = sshll.u32 (!%p279_p3), %s724_s25, 1 }
   0xd   : > { %282 = sbr.rel (%p279_p3) target bundleno = 327 (0x147), region = 40  ;;  %p337_p4 = scmp.lt.s32.totalorder (!%p279_p3), %s626_s29, 19 }
   0xe   : > { %s352_s30 = sld [smem:[#allocation3 + %s724_s25]] (!%p279_p3) }
   0xf   : > { %s372_s18 = sld [smem:[#allocation3 + %s724_s25]] (!%p279_p3) }
  0x10   : > { %s360_s22 = sld [smem:[#allocation3 + %s724_s25]] (!%p279_p3) }
  0x12   : > { %s855_s29 = smov (!%p337_p4, %s626_s29), 19  ;;  %p343_p5 = scmp.lt.s32.totalorder %s342_s28, 7  ;;  %vm393_vm0 = vcmask 261120  }
  0x13   : > { %s627_s8 = sshll.u32 %s855_s29, 2 }
  0x14   : > { %p353_p6 = scmp.lt.s32.totalorder %s352_s30, 7  ;;  %s857_s28 = smov (!%p343_p5, %s342_s28), 7 }
  0x15   : > { %s658_s7 = sshll.u32 %s857_s28, 4  ;;  %s340_s17 = scalar_lea.vmem %s844_s1, %s627_s8 }
  0x16   : > { %s859_s30 = smov (!%p353_p6, %s352_s30), 7  ;;  %s350_s11 = scalar_lea.vmem %s845_s2, %s658_s7  ;;  %v660_v2 = vld [vmem:[%s340_s17] sm:$0xff] }
  0x17   : > { %s358_s14 = scalar_lea.vmem %s846_s3, %s859_s30  ;;  %v662_v0 = vld [vmem:[%s350_s11 + $0x8] sm:$0xff]  ;;  %v661_v1 = vld [vmem:[%s350_s11] sm:$0xff]  ;;  %p373_p7 = scmp.lt.s32.totalorder %s372_s18, 7 }
  0x18   : > { %433 = vmatpush.bf16.msra.mxu0 %v662_v0  ;;  %p362_p8 = scmp.lt.s32.totalorder %s360_s22, 7  ;;  %v690_v5 = vld [vmem:[%s358_s14] ss:$0 sm:$0xff]  ;;  %s633_s7 = sshll.u32 %s855_s29, 3 }
  0x19   : > { %s861_s18 = smov (!%p373_p7, %s372_s18), 7  ;;  %s821_s10 = scalar_lea.vmem %s849_s6, %s633_s7 }
  0x1a   : > { %s375_s21 = scalar_lea.vmem %s848_s5, %s861_s18  ;;  %s863_s22 = smov (!%p362_p8, %s360_s22), 7 }
  0x1b   : > { %s659_s23 = sshll.u32 %s863_s22, 4  ;;  %v691_v8 = vld [vmem:[%s375_s21] ss:$0 sm:$0xff] }
  0x1c   : > { %434 = vmatpush.bf16.msra.mxu0 %v661_v1  ;;  %s369_s30 = scalar_lea.vmem %s847_s4, %s659_s23  ;;  %394 = vst.msk [vmem:[%s821_s10] sm:$0xff] %vm393_vm0, %v691_v8 }
  0x1d   : > { %v664_v3 = vld [vmem:[%s369_s30 + $0x8] sm:$0xff]  ;;  %v663_v4 = vld [vmem:[%s369_s30] sm:$0xff]  ;;  %395 = vst.msk [vmem:[%s821_s10 + $0x8] sm:$0xff] %vm393_vm0, %v691_v8 }
  0x1e   : > { %487 = vmatpush.bf16.msra.mxu1 %v664_v3 }
  0x1f   : > { %646 = vmatmul.msk.bf16.vlgmr.msra.gmra.mxu0 %vm393_vm0, %v660_v2 }
  0x22   : > { %488 = vmatpush.bf16.msra.mxu1 %v663_v4 }
  0x23   : > { %v459_v30 = vld [vmem:[%s821_s10] sm:$0xff] }
  0x24   : > { %v460_v33 = vld [vmem:[%s821_s10 + $0x8] sm:$0xff] }
  0x9c   : > { %v436_v6 = vpop.f32.mrf.mxu0 }
  0x9d   : > { %v437_v7 = vadd.f32 %v690_v5, %v436_v6 }
  0x9f   : > { %v443_v9 = vmul.f32 0.044715, %v437_v7  ;;  %v441_v24 = vmul.f32 0.5, %v437_v7 }
  0xa1   : > { %v445_v10 = vmul.f32 %v443_v9, %v437_v7 }
  0xa3   : > { %v447_v11 = vmul.f32 %v445_v10, %v437_v7 }
  0xa4   : > { %v438_v12 = vpop.f32.mrf.mxu0 }
  0xa5   : > { %v439_v13 = vadd.f32 %v690_v5, %v438_v12  ;;  %v449_v14 = vadd.f32 %v447_v11, %v437_v7 }
  0xa7   : > { %v444_v15 = vmul.f32 0.044715, %v439_v13  ;;  %v451_v17 = vmul.f32 0.7978846, %v449_v14  ;;  %v442_v25 = vmul.f32 0.5, %v439_v13 }
  0xa9   : > { %v446_v16 = vmul.f32 %v444_v15, %v439_v13  ;;  %692 = vtanh.f32 %v451_v17 }
  0xab   : > { %v448_v18 = vmul.f32 %v446_v16, %v439_v13 }
  0xad   : > { %v450_v19 = vadd.f32 %v448_v18, %v439_v13 }
  0xaf   : > { %v452_v20 = vmul.f32 0.7978846, %v450_v19  ;;  %v693_v21 = vpop.eup %692 }
  0xb0   : > { %v455_v22 = vadd.f32 1.0, %v693_v21 }
  0xb1   : > { %694 = vtanh.f32 %v452_v20 }
  0xb2   : > { %v457_v27 = vmul.f32 %v455_v22, %v441_v24 }
  0xb7   : > { %v695_v23 = vpop.eup %694 }
  0xb8   : > { %v456_v26 = vadd.f32 1.0, %v695_v23 }
  0xba   : > { %v458_v28 = vmul.f32 %v456_v26, %v442_v25 }
  0xbc   : > { %v461_v29 = vpack.c.bf16 %v458_v28, %v457_v27 }
  0xbe   : > { %655 = vmatmul.msk.bf16.vlgmr.msra.gmra.mxu1 %vm393_vm0, %v461_v29 }
 0x13b   : > { %v490_v31 = vpop.f32.mrf.mxu1 }
 0x13c   : > { %v495_v32 = vadd.f32 %v490_v31, %v459_v30 }
 0x13e   : > { %497 = vst.msk [vmem:[%s821_s10] sm:$0xff] %vm393_vm0, %v495_v32 }
 0x143   : > { %v492_v34 = vpop.f32.mrf.mxu1 }
 0x144   : > { %v496_v35 = vadd.f32 %v492_v34, %v460_v33 }
 0x146   : > { %498 = vst.msk [vmem:[%s821_s10 + $0x8] sm:$0xff] %vm393_vm0, %v496_v35 }
 0x147 PF: > { %s24_s27 = sadd.s32 1, %s732_s27   ;;  %s850_s25 = smov %s728_s26 }
 0x148   : > { %p21_p9 = scmp.ge.s32.totalorder %s24_s27, 12   ;;  %s851_s26 = smov %s853_s0 }
 0x14a   :  { %23 = sbr.rel (!%p21_p9) target bundleno = 8 (0x8), region = 86 }

// kernel: _lambda_.14
= control target key start
LH: loop header
LB: loop body
LE: loop exit
PB: predicated region body
PF: predicated region fallthrough
CT: control target
= control target key end

     0   :  { %vm54_vm0 = vcmask 261120   ;;  %v202_v10 = vmov 0   ;;  %s286_s3 = inlined_call_operand.vmem [shape: bf16[32,32], index: 3, kind: input, shape index: {}]   ;;  %s287_s4 = inlined_call_operand.vmem [shape: f32[1,32], index: 4, kind: input, shape index: {}]   ;;  %s288_s0 = inlined_call_operand.vmem [shape: bf16[16,32], index: 0, kind: input, shape index: {}]   ;;  %s289_s5 = inlined_call_operand.vmem [shape: bf16[32,32], index: 5, kind: input, shape index: {}]   ;;  %s290_s6 = inlined_call_operand.vmem [shape: f32[1,32], index: 6, kind: input, shape index: {}]   ;;  %s291_s2 = inlined_call_operand.vmem [shape: f32[16,1], index: 2, kind: input, shape index: {}]   ;;  %s292_s1 = inlined_call_operand.vmem [shape: f32[16,32], index: 1, kind: input, shape index: {}]   ;;  %s293_s7 = inlined_call_operand.vmem [shape: f32[16,32], index: 7, kind: output, shape index: {}]  }
   0x1   :  { %v190_v0 = vld [vmem:[%s286_s3 + $0x8] sm:$0xff]  ;;  %v189_v1 = vld [vmem:[%s286_s3] sm:$0xff]  ;;  %195 = vset.pattern.permute.xlu1 %v202_v10  ;;  %194 = vset.pattern.permute.xlu0 %v202_v10 }
   0x2   :  { %64 = vmatpush.bf16.msra.mxu0 %v190_v0  ;;  %v188_v2 = vld [vmem:[%s288_s0] sm:$0xff]  ;;  %v192_v3 = vld [vmem:[%s289_s5 + $0x8] sm:$0xff] }
   0x3   :  { %120 = vmatpush.bf16.msra.mxu1 %v192_v3  ;;  %v191_v4 = vld [vmem:[%s289_s5] sm:$0xff]  ;;  %v129_v13 = vld [vmem:[%s291_s2 + $0x8] sm:$0xff] }
   0x4   :  { %v196_v5 = vld [vmem:[%s287_s4] ss:$0 sm:$0xff]  ;;  %v145_v18 = vsub.f32 1.0, %v129_v13  ;;  %v131_v44 = vld [vmem:[%s292_s1 + $0x8] sm:$0xff] }
   0x5   :  { %v128_v8 = vld [vmem:[%s291_s2] sm:$0xff] }
   0x6   :  { %65 = vmatpush.bf16.msra.mxu0 %v189_v1  ;;  %v144_v11 = vsub.f32 1.0, %v128_v8  ;;  %134 = vperm.xlu0 %194, %v128_v8   ;;  %v197_v34 = vld [vmem:[%s290_s6] ss:$0 sm:$0xff] }
   0x7   :  { %121 = vmatpush.bf16.msra.mxu1 %v191_v4  ;;  %v130_v36 = vld [vmem:[%s292_s1] sm:$0xff] }
   0x8   :  { %148 = vperm.xlu1 %195, %v144_v11  }
   0x9   :  { %178 = vmatmul.msk.bf16.vlgmr.msra.gmra.mxu0 %vm54_vm0, %v188_v2 }
   0xe   :  { %139 = vperm.xlu0 %194, %v129_v13  }
  0x10   :  { %153 = vperm.xlu1 %195, %v145_v18  }
  0x78   :  { %v135_v35 = vpop.permute.xlu0 %134 }
  0x79   :  { %v142_v39 = vmul.f32 %v135_v35, %v130_v36 }
  0x7a   :  { %v149_v37 = vpop.permute.xlu1 %148 }
  0x80   :  { %v140_v43 = vpop.permute.xlu0 %139 }
  0x81   :  { %v143_v48 = vmul.f32 %v140_v43, %v131_v44 }
  0x82   :  { %v154_v47 = vpop.permute.xlu1 %153 }
  0x86   :  { %v67_v6 = vpop.f32.mrf.mxu0 }
  0x87   :  { %v68_v7 = vadd.f32 %v196_v5, %v67_v6 }
  0x89   :  { %v74_v9 = vmul.f32 0.044715, %v68_v7  ;;  %v72_v28 = vmul.f32 0.5, %v68_v7 }
  0x8b   :  { %v76_v12 = vmul.f32 %v74_v9, %v68_v7 }
  0x8d   :  { %v78_v14 = vmul.f32 %v76_v12, %v68_v7 }
  0x8e   :  { %v69_v15 = vpop.f32.mrf.mxu0 }
  0x8f   :  { %v70_v16 = vadd.f32 %v196_v5, %v69_v15  ;;  %v80_v17 = vadd.f32 %v78_v14, %v68_v7 }
  0x91   :  { %v75_v19 = vmul.f32 0.044715, %v70_v16  ;;  %v82_v21 = vmul.f32 0.7978846, %v80_v17  ;;  %v73_v29 = vmul.f32 0.5, %v70_v16 }
  0x93   :  { %v77_v20 = vmul.f32 %v75_v19, %v70_v16  ;;  %198 = vtanh.f32 %v82_v21 }
  0x95   :  { %v79_v22 = vmul.f32 %v77_v20, %v70_v16 }
  0x97   :  { %v81_v23 = vadd.f32 %v79_v22, %v70_v16 }
  0x99   :  { %v83_v24 = vmul.f32 0.7978846, %v81_v23  ;;  %v199_v25 = vpop.eup %198 }
  0x9a   :  { %v86_v26 = vadd.f32 1.0, %v199_v25 }
  0x9b   :  { %200 = vtanh.f32 %v83_v24 }
  0x9c   :  { %v88_v31 = vmul.f32 %v86_v26, %v72_v28 }
  0xa1   :  { %v201_v27 = vpop.eup %200 }
  0xa2   :  { %v87_v30 = vadd.f32 1.0, %v201_v27 }
  0xa4   :  { %v89_v32 = vmul.f32 %v87_v30, %v73_v29 }
  0xa6   :  { %v90_v33 = vpack.c.bf16 %v89_v32, %v88_v31 }
  0xa8   :  { %187 = vmatmul.msk.bf16.vlgmr.msra.gmra.mxu1 %vm54_vm0, %v90_v33 }
 0x125   :  { %v123_v38 = vpop.f32.mrf.mxu1 }
 0x126   :  { %v124_v40 = vadd.f32 %v197_v34, %v123_v38 }
 0x128   :  { %v156_v41 = vmul.f32 %v149_v37, %v124_v40 }
 0x12a   :  { %v158_v42 = vadd.f32 %v156_v41, %v142_v39 }
 0x12c   :  { %160 = vst.msk [vmem:[%s293_s7] sm:$0xff] %vm54_vm0, %v158_v42 }
 0x12d   :  { %v125_v45 = vpop.f32.mrf.mxu1 }
 0x12e   :  { %v126_v46 = vadd.f32 %v197_v34, %v125_v45 }
 0x130   :  { %v157_v49 = vmul.f32 %v154_v47, %v126_v46 }
 0x132   :  { %v159_v50 = vadd.f32 %v157_v49, %v143_v48 }
 0x134   :  { %161 = vst.msk [vmem:[%s293_s7 + $0x8] sm:$0xff] %vm54_vm0, %v159_v50 }

// kernel: _lambda_.23
= control target key start
LH: loop header
LB: loop body
LE: loop exit
PB: predicated region body
PF: predicated region fallthrough
CT: control target
= control target key end

     0   :  { %s330_s0 = inlined_call_operand.vmem [shape: bf16[16,32], index: 0, kind: input, shape index: {}]   ;;  %s331_s1 = inlined_call_operand.vmem [shape: f32[16,32], index: 1, kind: input, shape index: {}]   ;;  %s332_s2 = inlined_call_operand.vmem [shape: f32[16,1], index: 2, kind: input, shape index: {}]   ;;  %s333_s3 = inlined_call_operand.vmem [shape: bf16[32,32], index: 3, kind: input, shape index: {}]   ;;  %s334_s4 = inlined_call_operand.vmem [shape: f32[1,32], index: 4, kind: input, shape index: {}]   ;;  %s335_s5 = inlined_call_operand.vmem [shape: bf16[32,32], index: 5, kind: input, shape index: {}]   ;;  %s336_s6 = inlined_call_operand.vmem [shape: f32[1,32], index: 6, kind: input, shape index: {}]   ;;  %s337_s7 = inlined_call_operand.hbm [shape: f32[16,32], index: 7, kind: output, shape index: {}]  }
   0x1   :  { %v205_v0 = vld [vmem:[%s333_s3 + $0x8] sm:$0xff]  ;;  %v204_v1 = vld [vmem:[%s333_s3] sm:$0xff] }
   0x2   :  { %65 = vmatpush.bf16.msra.mxu0 %v205_v0 }
   0x3   :  { %12 = vsyncpa [#allocation3], 0  ;;  %v203_v2 = vld [vmem:[%s330_s0] sm:$0xff]  ;;  %vm55_vm0 = vcmask 261120   ;;  %v207_v3 = vld [vmem:[%s335_s5 + $0x8] sm:$0xff]  ;;  %v246_v10 = vmov 0  }
   0x4   :  { %121 = vmatpush.bf16.msra.mxu1 %v207_v3  ;;  %v206_v4 = vld [vmem:[%s335_s5] sm:$0xff]  ;;  %213 = vset.pattern.permute.xlu1 %v246_v10  ;;  %v130_v13 = vld [vmem:[%s332_s2 + $0x8] sm:$0xff]  ;;  %s169_s21 = sshll.u32 %s337_s7, 4  ;;  %s248_s22 = smov 128   ;;  %s170_s21 = int_to_ptr.hbm [resolvable:$true] %s169_s21 }
   0x5   :  { %v214_v5 = vld [vmem:[%s334_s4] ss:$0 sm:$0xff]  ;;  %212 = vset.pattern.permute.xlu0 %v246_v10  ;;  %v146_v18 = vsub.f32 1.0, %v130_v13  ;;  %v132_v43 = vld [vmem:[%s331_s1 + $0x8] sm:$0xff]  ;;  %s249_s23 = smov 8  }
   0x6   :  { %66 = vmatpush.bf16.msra.mxu0 %v204_v1  ;;  %v129_v8 = vld [vmem:[%s332_s2] sm:$0xff] }
   0x7   :  { %v145_v11 = vsub.f32 1.0, %v129_v8  ;;  %135 = vperm.xlu0 %212, %v129_v8   ;;  %v215_v34 = vld [vmem:[%s336_s6] ss:$0 sm:$0xff]  ;;  %s247_s6 = smov [#allocation2]  }
   0x8   :  { %122 = vmatpush.bf16.msra.mxu1 %v206_v4  ;;  %v131_v35 = vld [vmem:[%s331_s1] sm:$0xff]  ;;  %s167_s18 = sshll.u32 %s247_s6, 4  ;;  %s168_s18 = int_to_ptr.vmem [resolvable:$true] %s167_s18 }
   0x9   :  { %193 = vmatmul.msk.bf16.vlgmr.msra.gmra.mxu0 %vm55_vm0, %v203_v2  ;;  %149 = vperm.xlu1 %213, %v145_v11  }
   0xf   :  { %140 = vperm.xlu0 %212, %v130_v13  }
  0x11   :  { %154 = vperm.xlu1 %213, %v146_v18  }
  0x79   :  { %v136_v36 = vpop.permute.xlu0 %135 }
  0x7a   :  { %v143_v39 = vmul.f32 %v136_v36, %v131_v35 }
  0x7b   :  { %v150_v37 = vpop.permute.xlu1 %149 }
  0x81   :  { %v141_v44 = vpop.permute.xlu0 %140 }
  0x82   :  { %v144_v48 = vmul.f32 %v141_v44, %v132_v43 }
  0x83   :  { %v155_v47 = vpop.permute.xlu1 %154 }
  0x86   :  { %v68_v6 = vpop.f32.mrf.mxu0 }
  0x87   :  { %v69_v7 = vadd.f32 %v214_v5, %v68_v6 }
  0x89   :  { %v75_v9 = vmul.f32 0.044715, %v69_v7  ;;  %v73_v28 = vmul.f32 0.5, %v69_v7 }
  0x8b   :  { %v77_v12 = vmul.f32 %v75_v9, %v69_v7 }
  0x8d   :  { %v79_v14 = vmul.f32 %v77_v12, %v69_v7 }
  0x8e   :  { %v70_v15 = vpop.f32.mrf.mxu0 }
  0x8f   :  { %v71_v16 = vadd.f32 %v214_v5, %v70_v15  ;;  %v81_v17 = vadd.f32 %v79_v14, %v69_v7 }
  0x91   :  { %v76_v19 = vmul.f32 0.044715, %v71_v16  ;;  %v83_v21 = vmul.f32 0.7978846, %v81_v17  ;;  %v74_v29 = vmul.f32 0.5, %v71_v16 }
  0x93   :  { %v78_v20 = vmul.f32 %v76_v19, %v71_v16  ;;  %216 = vtanh.f32 %v83_v21 }
  0x95   :  { %v80_v22 = vmul.f32 %v78_v20, %v71_v16 }
  0x97   :  { %v82_v23 = vadd.f32 %v80_v22, %v71_v16 }
  0x99   :  { %v84_v24 = vmul.f32 0.7978846, %v82_v23  ;;  %v217_v25 = vpop.eup %216 }
  0x9a   :  { %v87_v26 = vadd.f32 1.0, %v217_v25 }
  0x9b   :  { %218 = vtanh.f32 %v84_v24 }
  0x9c   :  { %v89_v31 = vmul.f32 %v87_v26, %v73_v28 }
  0xa1   :  { %v219_v27 = vpop.eup %218 }
  0xa2   :  { %v88_v30 = vadd.f32 1.0, %v219_v27 }
  0xa4   :  { %v90_v32 = vmul.f32 %v88_v30, %v74_v29 }
  0xa6   :  { %v91_v33 = vpack.c.bf16 %v90_v32, %v89_v31 }
  0xa8   :  { %202 = vmatmul.msk.bf16.vlgmr.msra.gmra.mxu1 %vm55_vm0, %v91_v33 }
 0x125   :  { %v124_v38 = vpop.f32.mrf.mxu1 }
 0x126   :  { %v125_v40 = vadd.f32 %v215_v34, %v124_v38 }
 0x128   :  { %v157_v41 = vmul.f32 %v150_v37, %v125_v40 }
 0x12a   :  { %v159_v42 = vadd.f32 %v157_v41, %v143_v39 }
 0x12c   :  { %161 = vst.msk [vmem:[#allocation2] sm:$0xff] %vm55_vm0, %v159_v42 }
 0x12d   :  { %v126_v45 = vpop.f32.mrf.mxu1 }
 0x12e   :  { %v127_v46 = vadd.f32 %v215_v34, %v126_v45 }
 0x130   :  { %v158_v49 = vmul.f32 %v155_v47, %v127_v46 }
 0x132   :  { %v160_v50 = vadd.f32 %v158_v49, %v144_v48 }
 0x134   :  { %162 = vst.msk [vmem:[#allocation2 + $0x8] sm:$0xff] %vm55_vm0, %v160_v50 }
 0x135   :  { %175 = dma.vmem_to_hbm [thread:$0]  %s168_s18, 256, %s170_s21, [#allocation3], %s248_s22, %s248_s22, %s249_s23  }
 0x136   :  { %244 = dma.done.wait [#allocation3], 256  }
 0x137   :  { %245 = vsyncadd [#allocation3], 4294967040 }
 0x138   :  { %180 = vsyncpa [#allocation3], 1 }

</bundles_post_ra>
